<compile_context>
chip_gen: v5e
topology: v5e:2x2
jax: 0.10.0
libtpu: 0.0.40
codegen_flags: <defaults>
</compile_context>

<pallas_src>
import jax
import jax.numpy as jnp
from jax.experimental import pallas as pl
from jax.experimental.pallas import tpu as pltpu

NEG_SLOPE = 0.01      # nn.LeakyReLU default negative_slope
BN_EPS = 1e-5         # nn.BatchNorm3d default eps


def _round_up(x, m):
    return (x + m - 1) // m * m


def ssfpn_kernel(xa_ref, xb_ref, w_ref, scale3_ref, bias3_ref, zb_ref, o_ref):
    """One (batch, row-band) tile of fused conv3x3 + BN + LeakyReLU + depth-avg.

    xa_ref : (1, TH,  W+2, Cin) bf16   main rows of the halo window
    xb_ref : (1, 2,   W+2, Cin) bf16   bottom two halo rows (next band / pad)
    w_ref  : (9, Cin, Cout)     bf16   conv taps, (kh*3 + kw) major
    scale3_ref, bias3_ref, zb_ref : (1, Cout) f32  folded BN / depth-avg consts
    o_ref  : (1, TH*W, Cout)    f32
    """
    _, th, wp, cin = xa_ref.shape
    w_cols = wp - 2
    cout = o_ref.shape[2]

    # (TH+2, W+2, Cin) halo window for this band (leading-dim concat is cheap).
    win = jnp.concatenate([xa_ref[0], xb_ref[0]], axis=0)

    # 3x3 conv as 9 matmuls (bf16 operands, f32 accumulation on the MXU).
    acc = jnp.zeros((th * w_cols, cout), dtype=jnp.float32)
    for kh in range(3):
        rows = win[kh:kh + th]                                    # (TH, W+2, Cin)
        for kw in range(3):
            patch = rows[:, kw:kw + w_cols, :].reshape(th * w_cols, cin)
            acc = acc + jnp.dot(patch, w_ref[3 * kh + kw],
                                preferred_element_type=jnp.float32)

    # BN affine (inference) with the 1/3 depth average pre-folded into
    # scale/bias (leaky(y)/3 == leaky(y/3) since LeakyReLU is positively
    # homogeneous), LeakyReLU, then add the two zero depth-slice contributions.
    y = acc * scale3_ref[...] + bias3_ref[...]
    y = jnp.where(y > 0, y, NEG_SLOPE * y)
    o_ref[0] = (y + zb_ref[...]).astype(o_ref.dtype)


def _pick_band_rows(H, W, cin, cout, budget_bytes=8 << 20):
    """Largest even divisor of H whose (double-buffered) blocks fit the budget.

    VMEM footprints are estimated with lane/sublane padding; the budget stays
    well under v7x's 64 MiB (weights + consts stay resident on top)."""
    cin_l = _round_up(cin, 128)
    cout_l = _round_up(cout, 128)
    wp_s = _round_up(W + 2, 16)
    cands = [d for d in range(2, H + 1, 2)
             if H % d == 0 and ((d * W) % 8 == 0 or d == H)]
    if not cands:
        return H

    def footprint(th):
        xa = th * wp_s * cin_l * 2                      # bf16 main block
        xb = 2 * wp_s * cin_l * 2                       # bf16 halo block
        out = _round_up(th * W, 8) * cout_l * 4         # f32 output block
        win = (th + 2) * wp_s * cin_l * 2               # in-kernel window
        work = th * W * (cin_l * 2 + cout_l * 4)        # patch + f32 acc
        return 2 * (xa + xb + out) + win + work         # 2x for double-buffering

    fitting = [d for d in cands if footprint(d) <= budget_bytes]
    return max(fitting) if fitting else min(cands)


def ssfpn_forward(p3, p4, p5, w_hwio, gamma, beta, run_mean, run_var,
                  band_rows=None):
    """p3, p4, p5 in NCHW; returns NCHW output, like the PyTorch module."""
    B, C, H, W = p3.shape
    cin = 3 * C
    cout = w_hwio.shape[-1]
    bf16 = jnp.bfloat16

    # ---- host glue: nearest upsample + concat + NHWC + 1-px spatial pad ------
    # Note: only the *actual* Cin channels go to HBM (no 128-lane padding).
    up2 = jnp.repeat(jnp.repeat(p4.astype(bf16), 2, axis=2), 2, axis=3)
    up4 = jnp.repeat(jnp.repeat(p5.astype(bf16), 4, axis=2), 4, axis=3)
    x = jnp.concatenate([p3.astype(bf16), up2, up4], axis=1)       # (B, Cin, H, W)
    x = jnp.transpose(x, (0, 2, 3, 1))                             # NHWC
    xpad = jnp.pad(x, ((0, 0), (1, 1), (1, 1), (0, 0)))            # (B, H+2, W+2, Cin)

    # ---- fold BN running stats (+ 1/3 depth-avg) into per-channel constants --
    scale = gamma / jnp.sqrt(run_var + BN_EPS)
    bias = beta - run_mean * scale
    zb = jnp.where(bias > 0, bias, NEG_SLOPE * bias) * (2.0 / 3.0)   # zero-slice term
    scale3 = (scale / 3.0).reshape(1, cout).astype(jnp.float32)
    bias3 = (bias / 3.0).reshape(1, cout).astype(jnp.float32)
    zb = zb.reshape(1, cout).astype(jnp.float32)

    # conv weight: (3,3,Cin,Cout) HWIO -> (9, Cin, Cout), bf16, (kh*3+kw) major.
    w_k = w_hwio.reshape(9, cin, cout).astype(bf16)

    # ---- row-band tiling ------------------------------------------------------
    th = band_rows if band_rows is not None else _pick_band_rows(H, W, cin, cout)
    assert H % th == 0 and th % 2 == 0, (H, th)
    assert (th * W) % 8 == 0 or th == H, (th, W)
    n_bands = H // th

    out_flat = pl.pallas_call(
        ssfpn_kernel,
        out_shape=jax.ShapeDtypeStruct((B, H * W, cout), jnp.float32),
        grid=(B, n_bands),
        in_specs=[
            # main TH rows of the halo window: padded rows [i*TH, i*TH+TH-1]
            pl.BlockSpec((1, th, W + 2, cin), lambda b, i: (b, i, 0, 0)),
            # bottom 2 halo rows: padded rows [(i+1)*TH, (i+1)*TH+1]
            pl.BlockSpec((1, 2, W + 2, cin),
                         lambda b, i: (b, (i + 1) * (th // 2), 0, 0)),
            # weights / BN constants stay resident across the grid
            pl.BlockSpec((9, cin, cout), lambda b, i: (0, 0, 0)),
            pl.BlockSpec((1, cout), lambda b, i: (0, 0)),
            pl.BlockSpec((1, cout), lambda b, i: (0, 0)),
            pl.BlockSpec((1, cout), lambda b, i: (0, 0)),
        ],
        out_specs=pl.BlockSpec((1, th * W, cout), lambda b, i: (b, i, 0)),
        compiler_params=pltpu.CompilerParams(
            dimension_semantics=("parallel", "parallel"),
            vmem_limit_bytes=48 * 1024 * 1024,
        ),
    )(xpad, xpad, w_k, scale3, bias3, zb)

    # back to NCHW like the PyTorch module.
    out = out_flat.reshape(B, H, W, cout)
    return jnp.transpose(out, (0, 3, 1, 2))


def ssfpn_reference(p3, p4, p5, w_hwio, gamma, beta, run_mean, run_var,
                    conv_dtype=jnp.float32):
    """Pure-JAX reference mirroring the PyTorch ops (Conv3d / BN / act / pool).

    conv_dtype lets the reference apply the same bf16 rounding to the conv
    operands as the TPU kernel (both sides accumulate in f32)."""
    up2 = jnp.repeat(jnp.repeat(p4, 2, axis=2), 2, axis=3)
    up4 = jnp.repeat(jnp.repeat(p5, 4, axis=2), 4, axis=3)
    x = jnp.concatenate([p3, up2, up4], axis=1)
    x = x.astype(conv_dtype).astype(jnp.float32)[:, :, None, :, :]   # (B,Cin,1,H,W)
    w = w_hwio.astype(conv_dtype).astype(jnp.float32)
    w = jnp.transpose(w, (3, 2, 0, 1))[:, :, None, :, :]             # (Cout,Cin,1,3,3)
    y = jax.lax.conv_general_dilated(
        x, w, window_strides=(1, 1, 1),
        padding=((1, 1), (1, 1), (1, 1)),
        dimension_numbers=("NCDHW", "OIDHW", "NCDHW"),
        precision=jax.lax.Precision.HIGHEST)                         # (B,Cout,3,H,W)
    scale = gamma / jnp.sqrt(run_var + BN_EPS)
    bias = beta - run_mean * scale
    y = y * scale[None, :, None, None, None] + bias[None, :, None, None, None]
    y = jnp.where(y > 0, y, NEG_SLOPE * y)
    return jnp.mean(y, axis=2)                                       # AvgPool3d((3,1,1)) + squeeze


if __name__ == "__main__":
    key = jax.random.PRNGKey(0)
    k1, k2, k3, k4, k5, k6, k7, k8 = jax.random.split(key, 8)

    # Per-level FPN features (NCHW). Conv3d channel_in == 3 * per-level channels.
    B, C, H, W = 2, 4, 16, 16
    cin, cout = 3 * C, 3 * C

    p3 = jax.random.normal(k1, (B, C, H, W), dtype=jnp.float32)
    p4 = jax.random.normal(k2, (B, C, H // 2, W // 2), dtype=jnp.float32)
    p5 = jax.random.normal(k3, (B, C, H // 4, W // 4), dtype=jnp.float32)

    # Deterministic synthetic parameters (no checkpoint).
    w_hwio = 0.1 * jax.random.normal(k4, (3, 3, cin, cout), dtype=jnp.float32)
    gamma = 0.5 + jax.random.uniform(k5, (cout,), dtype=jnp.float32)
    beta = 0.1 * jax.random.normal(k6, (cout,), dtype=jnp.float32)
    run_mean = 0.1 * jax.random.normal(k7, (cout,), dtype=jnp.float32)
    run_var = 0.5 + jax.random.uniform(k8, (cout,), dtype=jnp.float32)

    # band_rows=8 -> 2 row bands per image: exercises the interior halo path.
    out = ssfpn_forward(p3, p4, p5, w_hwio, gamma, beta, run_mean, run_var,
                        band_rows=8)
    out = jax.block_until_ready(out)
    assert out.shape == (B, cout, H, W), out.shape

    # Tight check vs a reference using the same bf16 operand rounding.
    ref_bf16 = ssfpn_reference(p3, p4, p5, w_hwio, gamma, beta, run_mean,
                               run_var, conv_dtype=jnp.bfloat16)
    ref_bf16 = jax.block_until_ready(ref_bf16)
    assert jnp.allclose(out, ref_bf16, rtol=1e-3, atol=1e-3), \
        float(jnp.max(jnp.abs(out - ref_bf16)))

    # Loose sanity check vs the full-f32 reference (bounds bf16 rounding error).
    ref_f32 = ssfpn_reference(p3, p4, p5, w_hwio, gamma, beta, run_mean, run_var)
    assert jnp.allclose(out, ref_f32, rtol=5e-2, atol=5e-2), \
        float(jnp.max(jnp.abs(out - ref_f32)))

    print("KERNEL_OK")
</pallas_src>

<mosaic_0001>
module attributes {stable_mosaic.version = 11 : i64} {
  func.func @ssfpn_kernel(%arg0: i32, %arg1: i32, %arg2: memref<1x8x18x12xbf16, #tpu.memory_space<vmem>>, %arg3: memref<1x2x18x12xbf16, #tpu.memory_space<vmem>>, %arg4: memref<9x12x12xbf16, #tpu.memory_space<vmem>>, %arg5: memref<1x12xf32, #tpu.memory_space<vmem>>, %arg6: memref<1x12xf32, #tpu.memory_space<vmem>>, %arg7: memref<1x12xf32, #tpu.memory_space<vmem>>, %arg8: memref<1x128x12xf32, #tpu.memory_space<vmem>>) attributes {dimension_semantics = [#tpu.dimension_semantics<parallel>, #tpu.dimension_semantics<parallel>], iteration_bounds = array<i64: 2, 2>, scalar_prefetch = 0 : i64, scratch_operands = 0 : i64, tpu.core_type = #tpu.core_type<tc>, window_params = [{transform_indices = @transform_0, window_bounds = array<i64: 1, 8, 18, 12>}, {transform_indices = @transform_1, window_bounds = array<i64: 1, 2, 18, 12>}, {pipeline_mode = #tpu.pipeline_mode<synchronous>, transform_indices = @transform_2, window_bounds = array<i64: 9, 12, 12>}, {pipeline_mode = #tpu.pipeline_mode<synchronous>, transform_indices = @transform_3, window_bounds = array<i64: 1, 12>}, {pipeline_mode = #tpu.pipeline_mode<synchronous>, transform_indices = @transform_4, window_bounds = array<i64: 1, 12>}, {pipeline_mode = #tpu.pipeline_mode<synchronous>, transform_indices = @transform_5, window_bounds = array<i64: 1, 12>}, {transform_indices = @transform_6, window_bounds = array<i64: 1, 128, 12>}]} {
    %c0 = arith.constant 0 : index
    %c0_0 = arith.constant 0 : index
    %c0_1 = arith.constant 0 : index
    %c0_2 = arith.constant 0 : index
    %0 = vector.load %arg2[%c0, %c0_0, %c0_1, %c0_2] : memref<1x8x18x12xbf16, #tpu.memory_space<vmem>>, vector<1x8x18x12xbf16>
    %1 = vector.shape_cast %0 : vector<1x8x18x12xbf16> to vector<8x18x12xbf16>
    %c0_3 = arith.constant 0 : index
    %c0_4 = arith.constant 0 : index
    %c0_5 = arith.constant 0 : index
    %c0_6 = arith.constant 0 : index
    %2 = vector.load %arg3[%c0_3, %c0_4, %c0_5, %c0_6] : memref<1x2x18x12xbf16, #tpu.memory_space<vmem>>, vector<1x2x18x12xbf16>
    %3 = vector.shape_cast %2 : vector<1x2x18x12xbf16> to vector<2x18x12xbf16>
    %4 = tpu.concatenate %1, %3 in 0 : vector<8x18x12xbf16>, vector<2x18x12xbf16> -> vector<10x18x12xbf16>
    %cst = arith.constant 0.000000e+00 : f32
    %5 = vector.broadcast %cst : f32 to vector<128x12xf32>
    %6 = vector.extract_strided_slice %4 {offsets = [0, 0, 0], sizes = [8, 18, 12], strides = [1, 1, 1]} : vector<10x18x12xbf16> to vector<8x18x12xbf16>
    %7 = vector.extract_strided_slice %6 {offsets = [0, 0, 0], sizes = [8, 16, 12], strides = [1, 1, 1]} : vector<8x18x12xbf16> to vector<8x16x12xbf16>
    %8 = vector.shape_cast %7 : vector<8x16x12xbf16> to vector<128x12xbf16>
    %c0_7 = arith.constant 0 : index
    %c0_8 = arith.constant 0 : index
    %c0_9 = arith.constant 0 : index
    %9 = vector.load %arg4[%c0_7, %c0_8, %c0_9] : memref<9x12x12xbf16, #tpu.memory_space<vmem>>, vector<1x12x12xbf16>
    %10 = vector.shape_cast %9 : vector<1x12x12xbf16> to vector<12x12xbf16>
    %cst_10 = arith.constant dense<0.000000e+00> : vector<128x12xf32>
    %11 = tpu.matmul %8, %10, %cst_10 {dimension_numbers = #tpu.dot_dimension_numbers<[1], [0], [0], [1], [0, 0, 1, 1], [], []>} : vector<128x12xbf16>, vector<12x12xbf16>, vector<128x12xf32> -> vector<128x12xf32>
    %12 = arith.addf %5, %11 : vector<128x12xf32>
    %13 = vector.extract_strided_slice %6 {offsets = [0, 1, 0], sizes = [8, 16, 12], strides = [1, 1, 1]} : vector<8x18x12xbf16> to vector<8x16x12xbf16>
    %14 = vector.shape_cast %13 : vector<8x16x12xbf16> to vector<128x12xbf16>
    %c1 = arith.constant 1 : index
    %c0_11 = arith.constant 0 : index
    %c0_12 = arith.constant 0 : index
    %15 = vector.load %arg4[%c1, %c0_11, %c0_12] : memref<9x12x12xbf16, #tpu.memory_space<vmem>>, vector<1x12x12xbf16>
    %16 = vector.shape_cast %15 : vector<1x12x12xbf16> to vector<12x12xbf16>
    %cst_13 = arith.constant dense<0.000000e+00> : vector<128x12xf32>
    %17 = tpu.matmul %14, %16, %cst_13 {dimension_numbers = #tpu.dot_dimension_numbers<[1], [0], [0], [1], [0, 0, 1, 1], [], []>} : vector<128x12xbf16>, vector<12x12xbf16>, vector<128x12xf32> -> vector<128x12xf32>
    %18 = arith.addf %12, %17 : vector<128x12xf32>
    %19 = vector.extract_strided_slice %6 {offsets = [0, 2, 0], sizes = [8, 16, 12], strides = [1, 1, 1]} : vector<8x18x12xbf16> to vector<8x16x12xbf16>
    %20 = vector.shape_cast %19 : vector<8x16x12xbf16> to vector<128x12xbf16>
    %c2 = arith.constant 2 : index
    %c0_14 = arith.constant 0 : index
    %c0_15 = arith.constant 0 : index
    %21 = vector.load %arg4[%c2, %c0_14, %c0_15] : memref<9x12x12xbf16, #tpu.memory_space<vmem>>, vector<1x12x12xbf16>
    %22 = vector.shape_cast %21 : vector<1x12x12xbf16> to vector<12x12xbf16>
    %cst_16 = arith.constant dense<0.000000e+00> : vector<128x12xf32>
    %23 = tpu.matmul %20, %22, %cst_16 {dimension_numbers = #tpu.dot_dimension_numbers<[1], [0], [0], [1], [0, 0, 1, 1], [], []>} : vector<128x12xbf16>, vector<12x12xbf16>, vector<128x12xf32> -> vector<128x12xf32>
    %24 = arith.addf %18, %23 : vector<128x12xf32>
    %25 = vector.extract_strided_slice %4 {offsets = [1, 0, 0], sizes = [8, 18, 12], strides = [1, 1, 1]} : vector<10x18x12xbf16> to vector<8x18x12xbf16>
    %26 = vector.extract_strided_slice %25 {offsets = [0, 0, 0], sizes = [8, 16, 12], strides = [1, 1, 1]} : vector<8x18x12xbf16> to vector<8x16x12xbf16>
    %27 = vector.shape_cast %26 : vector<8x16x12xbf16> to vector<128x12xbf16>
    %c3 = arith.constant 3 : index
    %c0_17 = arith.constant 0 : index
    %c0_18 = arith.constant 0 : index
    %28 = vector.load %arg4[%c3, %c0_17, %c0_18] : memref<9x12x12xbf16, #tpu.memory_space<vmem>>, vector<1x12x12xbf16>
    %29 = vector.shape_cast %28 : vector<1x12x12xbf16> to vector<12x12xbf16>
    %cst_19 = arith.constant dense<0.000000e+00> : vector<128x12xf32>
    %30 = tpu.matmul %27, %29, %cst_19 {dimension_numbers = #tpu.dot_dimension_numbers<[1], [0], [0], [1], [0, 0, 1, 1], [], []>} : vector<128x12xbf16>, vector<12x12xbf16>, vector<128x12xf32> -> vector<128x12xf32>
    %31 = arith.addf %24, %30 : vector<128x12xf32>
    %32 = vector.extract_strided_slice %25 {offsets = [0, 1, 0], sizes = [8, 16, 12], strides = [1, 1, 1]} : vector<8x18x12xbf16> to vector<8x16x12xbf16>
    %33 = vector.shape_cast %32 : vector<8x16x12xbf16> to vector<128x12xbf16>
    %c4 = arith.constant 4 : index
    %c0_20 = arith.constant 0 : index
    %c0_21 = arith.constant 0 : index
    %34 = vector.load %arg4[%c4, %c0_20, %c0_21] : memref<9x12x12xbf16, #tpu.memory_space<vmem>>, vector<1x12x12xbf16>
    %35 = vector.shape_cast %34 : vector<1x12x12xbf16> to vector<12x12xbf16>
    %cst_22 = arith.constant dense<0.000000e+00> : vector<128x12xf32>
    %36 = tpu.matmul %33, %35, %cst_22 {dimension_numbers = #tpu.dot_dimension_numbers<[1], [0], [0], [1], [0, 0, 1, 1], [], []>} : vector<128x12xbf16>, vector<12x12xbf16>, vector<128x12xf32> -> vector<128x12xf32>
    %37 = arith.addf %31, %36 : vector<128x12xf32>
    %38 = vector.extract_strided_slice %25 {offsets = [0, 2, 0], sizes = [8, 16, 12], strides = [1, 1, 1]} : vector<8x18x12xbf16> to vector<8x16x12xbf16>
    %39 = vector.shape_cast %38 : vector<8x16x12xbf16> to vector<128x12xbf16>
    %c5 = arith.constant 5 : index
    %c0_23 = arith.constant 0 : index
    %c0_24 = arith.constant 0 : index
    %40 = vector.load %arg4[%c5, %c0_23, %c0_24] : memref<9x12x12xbf16, #tpu.memory_space<vmem>>, vector<1x12x12xbf16>
    %41 = vector.shape_cast %40 : vector<1x12x12xbf16> to vector<12x12xbf16>
    %cst_25 = arith.constant dense<0.000000e+00> : vector<128x12xf32>
    %42 = tpu.matmul %39, %41, %cst_25 {dimension_numbers = #tpu.dot_dimension_numbers<[1], [0], [0], [1], [0, 0, 1, 1], [], []>} : vector<128x12xbf16>, vector<12x12xbf16>, vector<128x12xf32> -> vector<128x12xf32>
    %43 = arith.addf %37, %42 : vector<128x12xf32>
    %44 = vector.extract_strided_slice %4 {offsets = [2, 0, 0], sizes = [8, 18, 12], strides = [1, 1, 1]} : vector<10x18x12xbf16> to vector<8x18x12xbf16>
    %45 = vector.extract_strided_slice %44 {offsets = [0, 0, 0], sizes = [8, 16, 12], strides = [1, 1, 1]} : vector<8x18x12xbf16> to vector<8x16x12xbf16>
    %46 = vector.shape_cast %45 : vector<8x16x12xbf16> to vector<128x12xbf16>
    %c6 = arith.constant 6 : index
    %c0_26 = arith.constant 0 : index
    %c0_27 = arith.constant 0 : index
    %47 = vector.load %arg4[%c6, %c0_26, %c0_27] : memref<9x12x12xbf16, #tpu.memory_space<vmem>>, vector<1x12x12xbf16>
    %48 = vector.shape_cast %47 : vector<1x12x12xbf16> to vector<12x12xbf16>
    %cst_28 = arith.constant dense<0.000000e+00> : vector<128x12xf32>
    %49 = tpu.matmul %46, %48, %cst_28 {dimension_numbers = #tpu.dot_dimension_numbers<[1], [0], [0], [1], [0, 0, 1, 1], [], []>} : vector<128x12xbf16>, vector<12x12xbf16>, vector<128x12xf32> -> vector<128x12xf32>
    %50 = arith.addf %43, %49 : vector<128x12xf32>
    %51 = vector.extract_strided_slice %44 {offsets = [0, 1, 0], sizes = [8, 16, 12], strides = [1, 1, 1]} : vector<8x18x12xbf16> to vector<8x16x12xbf16>
    %52 = vector.shape_cast %51 : vector<8x16x12xbf16> to vector<128x12xbf16>
    %c7 = arith.constant 7 : index
    %c0_29 = arith.constant 0 : index
    %c0_30 = arith.constant 0 : index
    %53 = vector.load %arg4[%c7, %c0_29, %c0_30] : memref<9x12x12xbf16, #tpu.memory_space<vmem>>, vector<1x12x12xbf16>
    %54 = vector.shape_cast %53 : vector<1x12x12xbf16> to vector<12x12xbf16>
    %cst_31 = arith.constant dense<0.000000e+00> : vector<128x12xf32>
    %55 = tpu.matmul %52, %54, %cst_31 {dimension_numbers = #tpu.dot_dimension_numbers<[1], [0], [0], [1], [0, 0, 1, 1], [], []>} : vector<128x12xbf16>, vector<12x12xbf16>, vector<128x12xf32> -> vector<128x12xf32>
    %56 = arith.addf %50, %55 : vector<128x12xf32>
    %57 = vector.extract_strided_slice %44 {offsets = [0, 2, 0], sizes = [8, 16, 12], strides = [1, 1, 1]} : vector<8x18x12xbf16> to vector<8x16x12xbf16>
    %58 = vector.shape_cast %57 : vector<8x16x12xbf16> to vector<128x12xbf16>
    %c8 = arith.constant 8 : index
    %c0_32 = arith.constant 0 : index
    %c0_33 = arith.constant 0 : index
    %59 = vector.load %arg4[%c8, %c0_32, %c0_33] : memref<9x12x12xbf16, #tpu.memory_space<vmem>>, vector<1x12x12xbf16>
    %60 = vector.shape_cast %59 : vector<1x12x12xbf16> to vector<12x12xbf16>
    %cst_34 = arith.constant dense<0.000000e+00> : vector<128x12xf32>
    %61 = tpu.matmul %58, %60, %cst_34 {dimension_numbers = #tpu.dot_dimension_numbers<[1], [0], [0], [1], [0, 0, 1, 1], [], []>} : vector<128x12xbf16>, vector<12x12xbf16>, vector<128x12xf32> -> vector<128x12xf32>
    %62 = arith.addf %56, %61 : vector<128x12xf32>
    %c0_35 = arith.constant 0 : index
    %c0_36 = arith.constant 0 : index
    %63 = vector.load %arg5[%c0_35, %c0_36] : memref<1x12xf32, #tpu.memory_space<vmem>>, vector<1x12xf32>
    %64 = vector.broadcast %63 : vector<1x12xf32> to vector<128x12xf32>
    %65 = arith.mulf %62, %64 : vector<128x12xf32>
    %c0_37 = arith.constant 0 : index
    %c0_38 = arith.constant 0 : index
    %66 = vector.load %arg6[%c0_37, %c0_38] : memref<1x12xf32, #tpu.memory_space<vmem>>, vector<1x12xf32>
    %67 = vector.broadcast %66 : vector<1x12xf32> to vector<128x12xf32>
    %68 = arith.addf %65, %67 : vector<128x12xf32>
    %cst_39 = arith.constant 0.000000e+00 : f32
    %69 = vector.broadcast %cst_39 : f32 to vector<128x12xf32>
    %70 = arith.cmpf ogt, %68, %69 : vector<128x12xf32>
    %cst_40 = arith.constant 0.00999999977 : f32
    %71 = vector.broadcast %cst_40 : f32 to vector<128x12xf32>
    %72 = arith.mulf %71, %68 : vector<128x12xf32>
    %73 = arith.select %70, %68, %72 : vector<128x12xi1>, vector<128x12xf32>
    %c0_41 = arith.constant 0 : index
    %c0_42 = arith.constant 0 : index
    %74 = vector.load %arg7[%c0_41, %c0_42] : memref<1x12xf32, #tpu.memory_space<vmem>>, vector<1x12xf32>
    %75 = vector.broadcast %74 : vector<1x12xf32> to vector<128x12xf32>
    %76 = arith.addf %73, %75 : vector<128x12xf32>
    %c0_43 = arith.constant 0 : index
    %c0_44 = arith.constant 0 : index
    %c0_45 = arith.constant 0 : index
    %77 = vector.load %arg8[%c0_43, %c0_44, %c0_45] : memref<1x128x12xf32, #tpu.memory_space<vmem>>, vector<1x128x12xf32>
    %78 = vector.shape_cast %77 : vector<1x128x12xf32> to vector<128x12xf32>
    %79 = vector.shape_cast %76 : vector<128x12xf32> to vector<1x128x12xf32>
    tpu.vector_store %arg8[%c0_43, %c0_44, %c0_45], %79 {strides = array<i32>} : memref<1x128x12xf32, #tpu.memory_space<vmem>>, vector<1x128x12xf32>,
    return
  }
  func.func @transform_0(%arg0: i32, %arg1: i32) -> (i32, i32, i32, i32) {
    %c0_i32 = arith.constant 0 : i32
    %c0_i32_0 = arith.constant 0 : i32
    %c0_i32_1 = arith.constant 0 : i32
    return %arg0, %arg1, %c0_i32, %c0_i32_0 : i32, i32, i32, i32
  }
  func.func @transform_1(%arg0: i32, %arg1: i32) -> (i32, i32, i32, i32) {
    %c1_i32 = arith.constant 1 : i32
    %0 = arith.addi %arg1, %c1_i32 : i32
    %c4_i32 = arith.constant 4 : i32
    %1 = arith.muli %0, %c4_i32 : i32
    %c0_i32 = arith.constant 0 : i32
    %c0_i32_0 = arith.constant 0 : i32
    %c0_i32_1 = arith.constant 0 : i32
    return %arg0, %1, %c0_i32, %c0_i32_0 : i32, i32, i32, i32
  }
  func.func @transform_2(%arg0: i32, %arg1: i32) -> (i32, i32, i32) {
    %c0_i32 = arith.constant 0 : i32
    %c0_i32_0 = arith.constant 0 : i32
    %c0_i32_1 = arith.constant 0 : i32
    %c0_i32_2 = arith.constant 0 : i32
    return %c0_i32, %c0_i32_0, %c0_i32_1 : i32, i32, i32
  }
  func.func @transform_3(%arg0: i32, %arg1: i32) -> (i32, i32) {
    %c0_i32 = arith.constant 0 : i32
    %c0_i32_0 = arith.constant 0 : i32
    %c0_i32_1 = arith.constant 0 : i32
    return %c0_i32, %c0_i32_0 : i32, i32
  }
  func.func @transform_4(%arg0: i32, %arg1: i32) -> (i32, i32) {
    %c0_i32 = arith.constant 0 : i32
    %c0_i32_0 = arith.constant 0 : i32
    %c0_i32_1 = arith.constant 0 : i32
    return %c0_i32, %c0_i32_0 : i32, i32
  }
  func.func @transform_5(%arg0: i32, %arg1: i32) -> (i32, i32) {
    %c0_i32 = arith.constant 0 : i32
    %c0_i32_0 = arith.constant 0 : i32
    %c0_i32_1 = arith.constant 0 : i32
    return %c0_i32, %c0_i32_0 : i32, i32
  }
  func.func @transform_6(%arg0: i32, %arg1: i32) -> (i32, i32, i32) {
    %c0_i32 = arith.constant 0 : i32
    %c0_i32_0 = arith.constant 0 : i32
    return %arg0, %arg1, %c0_i32 : i32, i32, i32
  }
}

</mosaic_0001>

<bundles_post_ra>
// kernel: tpu_custom_call.1
= control target key start
LH: loop header
LB: loop body
LE: loop exit
PB: predicated region body
PF: predicated region fallthrough
CT: control target
= control target key end

     0   :  { %s2163_s21 = smov 0   ;;  %s2165_s22 = smov 0   ;;  %s2946_s0 = inlined_call_operand.vmem [shape: bf16[2,18,18,12], index: 0, kind: input, shape index: {}]   ;;  %s2947_s1 = inlined_call_operand.vmem [shape: bf16[2,18,18,12], index: 1, kind: input, shape index: {}]   ;;  %s2948_s2 = inlined_call_operand.vmem [shape: bf16[9,12,12], index: 2, kind: input, shape index: {}]   ;;  %s2949_s3 = inlined_call_operand.vmem [shape: f32[1,12], index: 3, kind: input, shape index: {}]   ;;  %s2950_s4 = inlined_call_operand.vmem [shape: f32[1,12], index: 4, kind: input, shape index: {}]   ;;  %s2951_s5 = inlined_call_operand.vmem [shape: f32[1,12], index: 5, kind: input, shape index: {}]   ;;  %s2952_s6 = inlined_call_operand.vmem [shape: f32[2,256,12], index: 6, kind: output, shape index: {}]  }
   0x1   :  { %s2167_s23 = smov 0   ;;  %s2169_s24 = smov 0  }
   0x2   :  { %s2171_s25 = smov 0  }
   0x3 LB: > { %s25_s26 = sadd.s32 1, %s2118_s23  ;;  %s28_s27 = sadd.s32 1, %s2122_s24  ;;  %s2126_s25 = sphi %s2171_s25, %s16_s25   ;;  %s2122_s24 = sphi %s2169_s24, %s2960_s24   ;;  %s2118_s23 = sphi %s2167_s23, %s2959_s23   ;;  %s2114_s22 = sphi %s2165_s22, %s2958_s22   ;;  %s2110_s21 = sphi %s2163_s21, %s2957_s21  }
   0x4   : > { %p26_p0 = scmp.ge.s32.totalorder %s25_s26, 2  ;;  %p1826_p1 = scmp.ge.s32.totalorder %s2126_s25, 1 }
   0x5   : > { %p270_p2 = scmp.lt.s32.totalorder %s2126_s25, 5 }
   0x6   : > { %s2962_s26 = smov (%p26_p0, %s25_s26), 0  ;;  %s2964_s27 = smov (!%p26_p0, %s28_s27), %s2122_s24 }
   0x7   : > { %p271_p3 = pnand %p1826_p1, %p270_p2  ;;  %p30_p4 = scmp.ge.s32.totalorder %s2964_s27, 2 }
   0x8   : > { %s2202_s8 = sshll.u32 (!%p271_p3), %s2110_s21, 3  ;;  %p332_p5 = scmp.lt.s32.totalorder (!%p271_p3), %s2114_s22, 1 }
   0x9   : > { %s2966_s27 = smov (%p30_p4, %s2964_s27), 0  ;;  %274 = sbr.rel (%p271_p3) target bundleno = 475 (0x1db), region = 44 }
   0xa   : > { %p334_p6 = scmp.lt.s32.totalorder (!%p271_p3), %s2202_s8, 17  ;;  %s2038_s18 = sadd.s32 (!%p271_p3), 8, %s2202_s8 }
   0xb   : > { %p352_p7 = scmp.lt.s32.totalorder (!%p271_p3), %s2038_s18, 17 }
   0xe   : > { %v1839_v0 = vld [vmem:[%s2948_s2 + $0x8] sm:$0xf]  ;;  %v2029_v1 = vld [vmem:[%s2948_s2 + $0x8] sm:$0x30]  ;;  %vm657_vm0 = vcmask 1045504   ;;  %s2968_s22 = smov (!%p332_p5, %s2114_s22), 1 }
   0xf   : > { %v1840_v2 = vor.u32 %v2029_v1, %v1839_v0  ;;  %v1905_v3 = vld [vmem:[%s2948_s2 + $0x10] sm:$0xf]  ;;  %v2030_v4 = vld [vmem:[%s2948_s2 + $0x10] sm:$0x30]  ;;  %s335_s13 = scalar_select %p334_p6, %s2202_s8, 17  ;;  %vm632_vm3 = vcmask 97280  }
  0x10   : > { %v1906_v6 = vor.u32 %v2030_v4, %v1905_v3  ;;  %s2043_s14 = smul.u32 54, %s2968_s22  ;;  %v1923_v8 = vld [vmem:[%s2948_s2 + $0x18] sm:$0xf]  ;;  %v2031_v9 = vld [vmem:[%s2948_s2 + $0x18] sm:$0x30]  ;;  %s2970_s18 = smov (!%p352_p7, %s2038_s18), 17 }
  0x11   : > { %v659_v5 = vsel %vm657_vm0, %v1840_v2, 0  ;;  %s2042_s15 = smul.u32 3, %s335_s13  ;;  %vm405_vm1 = vsmask.f32 3328  ;;  %vm406_vm2 = vsmask.f32 7440  ;;  %v1924_v10 = vor.u32 %v2031_v9, %v1923_v8 }
  0x12   : > { %2039 = vmatpush.bf16.msra.mxu1 %v659_v5  ;;  %2040 = vmatpush.bf16.msra.mxu2 %v659_v5  ;;  %v955_v7 = vsel %vm657_vm0, %v1906_v6, 0  ;;  %v2228_v11 = vld [vmem:[%s2948_s2] sm:$0xf]  ;;  %v2233_v12 = vld [vmem:[%s2948_s2] sm:$0x30]  ;;  %vm2291_vm4 = vmor %vm405_vm1, %vm406_vm2  ;;  %s2044_s8 = smul.u32 3, %s2970_s18 }
  0x13   : > { %2041 = vmatpush.bf16.msra.mxu3 %v659_v5  ;;  %668 = vmatpush.bf16.msra.mxu0 %v659_v5  ;;  %s338_s20 = sadd.s32 %s2043_s14, %s2042_s15  ;;  %v1039_v13 = vsel %vm657_vm0, %v1924_v10, 0  ;;  %v2244_v14 = vld [vmem:[%s2948_s2 + $0x20] sm:$0xf]  ;;  %v2249_v15 = vld [vmem:[%s2948_s2 + $0x20] sm:$0x30]  ;;  %v1884_v28 = vor.u32 %v2233_v12, %v2228_v11  ;;  %vm839_vm5 = vcmask 1042432  }
  0x14   : > { %s1828_s28 = sshll.u32 %s338_s20, 2  ;;  %v1938_v29 = vor.u32 %v2249_v15, %v2244_v14  ;;  %s2411_s19 = sadd.s32 %s2044_s8, %s2043_s14  ;;  %vm840_vm6 = vcmask 1046532  }
  0x15   : > { %s2238_s12 = scalar_lea.vmem %s2946_s0, %s1828_s28  ;;  %vm2457_vm7 = vmor %vm839_vm5, %vm840_vm6  ;;  %s1831_s20 = sshll.u32 %s2411_s19, 2 }
  0x16   : > { %964 = vmatpush.bf16.msrb.mxu2 %v955_v7  ;;  %v2252_v16 = vld [vmem:[%s2238_s12 + $0x18] sm:$0xf]  ;;  %v2255_v17 = vld [vmem:[%s2238_s12 + $0x1c] sm:$0xf]  ;;  %v2258_v18 = vld [vmem:[%s2238_s12 + $0x20] sm:$0x1]  ;;  %s2602_s30 = scalar_lea.vmem %s2947_s1, %s1831_s20 }
  0x17   : > { %1048 = vmatpush.bf16.msrb.mxu3 %v1039_v13  ;;  %v457_v19 = vshrl.u32 %v2252_v16, 16  ;;  %v460_v20 = vshll.u32 %v2252_v16, 16  ;;  %v466_v21 = vshll.u32 %v2255_v17, 16  ;;  %v470_v22 = vshrl.u32 %v2255_v17, 16  ;;  %v2265_v23 = vld [vmem:[%s2238_s12 + $0x30] sm:$0xf] }
  0x18   : > { %v476_v24 = vshll.u32 %v2258_v18, 16  ;;  %v2269_v25 = vld [vmem:[%s2238_s12 + $0x34] sm:$0xf]  ;;  %v2272_v26 = vld [vmem:[%s2238_s12 + $0x38] sm:$0x1]  ;;  %v505_v27 = vshrl.u32 %v2265_v23, 16 }
  0x19   : > { %v459_v30 = vrot.slane %v457_v19, 4  ;;  %v462_v31 = vrot.slane %v460_v20, 5  ;;  %v468_v32 = vrot.slane %v466_v21, 5  ;;  %v472_v33 = vrot.slane %v470_v22, 4  ;;  %v2280_v34 = vld [vmem:[%s2238_s12 + $0x48] sm:$0xf] }
  0x1a   : > { %v478_v35 = vrot.slane %v476_v24, 5  ;;  %v507_v36 = vrot.slane %v505_v27, 4  ;;  %v508_v37 = vshll.u32 %v2265_v23, 16  ;;  %v514_v38 = vshll.u32 %v2269_v25, 16  ;;  %v2287_v43 = vld [vmem:[%s2238_s12 + $0x4c] sm:$0xf] }
  0x1b   : > { %v463_v39 = vor.u32 %v462_v31, %v459_v30  ;;  %v473_v40 = vor.u32 %v472_v33, %v468_v32  ;;  %v518_v41 = vshrl.u32 %v2269_v25, 16  ;;  %v524_v42 = vshll.u32 %v2272_v26, 16  ;;  %v2298_v54 = vld [vmem:[%s2238_s12 + $0x50] sm:$0x1]  ;;  %v2307_v62 = vld [vmem:[%s2238_s12] sm:$0xf] }
  0x1c   : > { %v510_v45 = vrot.slane %v508_v37, 5  ;;  %v516_v46 = vrot.slane %v514_v38, 5  ;;  %v553_v47 = vshrl.u32 %v2280_v34, 16  ;;  %v556_v48 = vshll.u32 %v2280_v34, 16  ;;  %v2315_v10 = vld [vmem:[%s2238_s12 + $0x4] sm:$0xf] }
  0x1d   : > { %v464_v49 = vrot.slane %v463_v39, 4  ;;  %v474_v50 = vrot.slane %v473_v40, 4  ;;  %v520_v51 = vrot.slane %v518_v41, 4  ;;  %v526_v52 = vrot.slane %v524_v42, 5  ;;  %v2321_v24 = vld [vmem:[%s2238_s12 + $0x8] sm:$0x1] }
  0x1e   : > { %v511_v53 = vor.u32 %v510_v45, %v507_v36  ;;  %v555_v55 = vrot.slane %v553_v47, 4  ;;  %v558_v56 = vrot.slane %v556_v48, 5  ;;  %v562_v57 = vshll.u32 %v2287_v43, 16  ;;  %v2331_v38 = vld [vmem:[%s2238_s12 + $0x24] sm:$0xf]  ;;  %s1833_s9 = sshll.u32 %s2968_s22, 5 }
  0x1f   : > { %v469_v58 = vsel %vm2291_vm4, %v464_v49, %v468_v32  ;;  %v479_v59 = vsel %vm2291_vm4, %v474_v50, %v478_v35  ;;  %v521_v60 = vor.u32 %v520_v51, %v516_v46  ;;  %v566_v61 = vshrl.u32 %v2287_v43, 16  ;;  %v2338_v45 = vld [vmem:[%s2238_s12 + $0x28] sm:$0xf]  ;;  %v2347_v50 = vld [vmem:[%s2238_s12 + $0x2c] sm:$0x1] }
  0x20   : > { %v607_v63 = vunpack.c.l.b16 %v469_v58  ;;  %v608_v0 = vunpack.c.l.b16 %v479_v59  ;;  %v512_v1 = vrot.slane %v511_v53, 4  ;;  %v559_v2 = vor.u32 %v558_v56, %v555_v55 }
  0x21   : > { %v522_v3 = vrot.slane %v521_v60, 4  ;;  %v564_v4 = vrot.slane %v562_v57, 5  ;;  %v568_v5 = vrot.slane %v566_v61, 4  ;;  %v572_v6 = vshll.u32 %v2298_v54, 16  ;;  %v2359_v57 = vld [vmem:[%s2238_s12 + $0x3c] sm:$0xf] }
  0x22   : > { %v2310_v7 = vpack.c.b16 %v608_v0, %v607_v63  ;;  %v517_v8 = vsel %vm2291_vm4, %v512_v1, %v516_v46  ;;  %v560_v9 = vrot.slane %v559_v2, 4  ;;  %v409_v13 = vshrl.u32 %v2307_v62, 16  ;;  %v2366_v0 = vld [vmem:[%s2238_s12 + $0x40] sm:$0xf] }
  0x23   : > { %v527_v19 = vsel %vm2291_vm4, %v522_v3, %v526_v52  ;;  %v611_v20 = vunpack.c.l.b16 %v517_v8  ;;  %v569_v21 = vor.u32 %v568_v5, %v564_v4  ;;  %v574_v22 = vrot.slane %v572_v6, 5 }
  0x24   : > { %1843 = vmatmul.msk.bf16.vlgmr.msra.gmra.mxu1 %vm632_vm3, %v2310_v7  ;;  %v612_v27 = vunpack.c.l.b16 %v527_v19  ;;  %v565_v30 = vsel %vm2291_vm4, %v560_v9, %v564_v4  ;;  %v411_v31 = vrot.slane %v409_v13, 4  ;;  %v412_v32 = vshll.u32 %v2307_v62, 16  ;;  %v2373_v4 = vld [vmem:[%s2238_s12 + $0x44] sm:$0x1]  ;;  %v2380_v19 = vld [vmem:[%s2238_s12 + $0x54] sm:$0xf] }
  0x25   : > { %v570_v33 = vrot.slane %v569_v21, 4  ;;  %v615_v35 = vunpack.c.l.b16 %v565_v30  ;;  %v418_v36 = vshll.u32 %v2315_v10, 16  ;;  %v422_v37 = vshrl.u32 %v2315_v10, 16 }
  0x26   : > { %v2333_v39 = vpack.c.b16 %v612_v27, %v611_v20  ;;  %v414_v40 = vrot.slane %v412_v32, 5  ;;  %v428_v41 = vshll.u32 %v2321_v24, 16  ;;  %v847_v42 = vrot.slane %v2321_v24, 5 }
  0x27   : > { %v575_v46 = vsel %vm2291_vm4, %v570_v33, %v574_v22  ;;  %v420_v47 = vrot.slane %v418_v36, 5  ;;  %v424_v48 = vrot.slane %v422_v37, 4  ;;  %v780_v49 = vsel %vm657_vm0, %v1884_v28, 0 }
  0x28   : > { %1845 = vmatmul.msk.bf16.vlgmr.msra.gmra.mxu2 %vm632_vm3, %v2333_v39  ;;  %v616_v51 = vunpack.c.l.b16 %v575_v46  ;;  %v415_v52 = vor.u32 %v414_v40, %v411_v31  ;;  %v430_v53 = vrot.slane %v428_v41, 5  ;;  %789 = vmatpush.bf16.msrb.mxu1 %v780_v49  ;;  %v1145_v55 = vsel %vm657_vm0, %v1938_v29, 0  ;;  %v2387_v40 = vld [vmem:[%s2238_s12 + $0x58] sm:$0xf] }
  0x29   : > { %v425_v56 = vor.u32 %v424_v48, %v420_v47  ;;  %1154 = vmatpush.bf16.msrb.mxu0 %v1145_v55  ;;  %v481_v11 = vshrl.u32 %v2331_v38, 16  ;;  %v484_v12 = vshll.u32 %v2331_v38, 16  ;;  %v490_v28 = vshll.u32 %v2338_v45, 16 }
  0x2a   : > { %v2361_v58 = vpack.c.b16 %v616_v51, %v615_v35  ;;  %v416_v59 = vrot.slane %v415_v52, 4  ;;  %v494_v60 = vshrl.u32 %v2338_v45, 16  ;;  %v500_v14 = vshll.u32 %v2347_v50, 16  ;;  %v2393_v51 = vld [vmem:[%s2238_s12 + $0x5c] sm:$0x1] }
  0x2b   : > { %v426_v15 = vrot.slane %v425_v56, 4  ;;  %v483_v29 = vrot.slane %v481_v11, 4  ;;  %v486_v61 = vrot.slane %v484_v12, 5  ;;  %v492_v63 = vrot.slane %v490_v28, 5  ;;  %v2396_v52 = vld [vmem:[%s2238_s12 + $0xc] sm:$0xf] }
  0x2c   : > { %1847 = vmatmul.msk.bf16.vlgmr.msra.gmra.mxu3 %vm632_vm3, %v2361_v58  ;;  %v421_v1 = vsel %vm2291_vm4, %v416_v59, %v420_v47  ;;  %v496_v2 = vrot.slane %v494_v60, 4  ;;  %v502_v3 = vrot.slane %v500_v14, 5  ;;  %v529_v5 = vshrl.u32 %v2359_v57, 16 }
  0x2d   : > { %v431_v6 = vsel %vm2291_vm4, %v426_v15, %v430_v53  ;;  %v603_v8 = vunpack.c.l.b16 %v421_v1  ;;  %v487_v9 = vor.u32 %v486_v61, %v483_v29  ;;  %v532_v13 = vshll.u32 %v2359_v57, 16  ;;  %v2406_v61 = vld [vmem:[%s2238_s12 + $0x10] sm:$0xf] }
  0x2e   : > { %v604_v20 = vunpack.c.l.b16 %v431_v6  ;;  %v497_v21 = vor.u32 %v496_v2, %v492_v63  ;;  %v531_v22 = vrot.slane %v529_v5, 4  ;;  %v538_v27 = vshll.u32 %v2366_v0, 16 }
  0x2f   : > { %v488_v30 = vrot.slane %v487_v9, 4  ;;  %v534_v31 = vrot.slane %v532_v13, 5  ;;  %v542_v32 = vshrl.u32 %v2366_v0, 16  ;;  %v548_v33 = vshll.u32 %v2373_v4, 16 }
  0x30   : > { %v619_v35 = vpack.c.b16 %v604_v20, %v603_v8  ;;  %v498_v36 = vrot.slane %v497_v21, 4  ;;  %v540_v37 = vrot.slane %v538_v27, 5  ;;  %v577_v41 = vshrl.u32 %v2380_v19, 16  ;;  %v2418_v20 = vld [vmem:[%s2238_s12 + $0x14] sm:$0x1] }
  0x31   : > { %v493_v46 = vsel %vm2291_vm4, %v488_v30, %v492_v63  ;;  %v535_v47 = vor.u32 %v534_v31, %v531_v22  ;;  %v544_v48 = vrot.slane %v542_v32, 4  ;;  %v550_v49 = vrot.slane %v548_v33, 5 }
  0x32   : > { %1841 = vmatmul.msk.bf16.vlgmr.msra.gmra.mxu0 %vm632_vm3, %v619_v35  ;;  %v503_v53 = vsel %vm2291_vm4, %v498_v36, %v502_v3  ;;  %v609_v55 = vunpack.c.l.b16 %v493_v46  ;;  %v579_v56 = vrot.slane %v577_v41, 4  ;;  %v580_v11 = vshll.u32 %v2380_v19, 16  ;;  %v1970_v36 = vld [vmem:[%s2948_s2 + $0x30] sm:$0xf] }
  0x33   : > { %v610_v12 = vunpack.c.l.b16 %v503_v53  ;;  %v536_v28 = vrot.slane %v535_v47, 4  ;;  %v545_v59 = vor.u32 %v544_v48, %v540_v37  ;;  %v586_v60 = vshll.u32 %v2387_v40, 16  ;;  %v2034_v47 = vld [vmem:[%s2948_s2 + $0x30] sm:$0x30] }
  0x34   : > { %v582_v14 = vrot.slane %v580_v11, 5  ;;  %v590_v15 = vshrl.u32 %v2387_v40, 16  ;;  %v596_v29 = vshll.u32 %v2393_v51, 16  ;;  %v433_v63 = vshrl.u32 %v2396_v52, 16  ;;  %v2035_v11 = vld [vmem:[%s2948_s2 + $0x38] sm:$0x30] }
  0x35   : > { %v2413_v1 = vpack.c.b16 %v610_v12, %v609_v55  ;;  %v541_v2 = vsel %vm2291_vm4, %v536_v28, %v540_v37  ;;  %v546_v3 = vrot.slane %v545_v59, 4  ;;  %v588_v5 = vrot.slane %v586_v60, 5  ;;  %v1952_v60 = vld [vmem:[%s2948_s2 + $0x28] sm:$0xf] }
  0x36   : > { %v613_v6 = vunpack.c.l.b16 %v541_v2  ;;  %v583_v8 = vor.u32 %v582_v14, %v579_v56  ;;  %v592_v9 = vrot.slane %v590_v15, 4  ;;  %v598_v13 = vrot.slane %v596_v29, 5  ;;  %v1984_v56 = vld [vmem:[%s2948_s2 + $0x38] sm:$0xf]  ;;  %v2033_v14 = vld [vmem:[%s2948_s2 + $0x28] sm:$0x30] }
  0x37   : > { %1844 = vmatmul.msk.bf16.gmra.mxu1 %vm632_vm3, %v2413_v1  ;;  %v551_v21 = vsel %vm2291_vm4, %v546_v3, %v550_v49  ;;  %v435_v22 = vrot.slane %v433_v63, 4  ;;  %v436_v27 = vshll.u32 %v2396_v52, 16  ;;  %v442_v30 = vshll.u32 %v2406_v61, 16 }
  0x38   : > { %v614_v31 = vunpack.c.l.b16 %v551_v21  ;;  %v584_v32 = vrot.slane %v583_v8, 4  ;;  %v593_v33 = vor.u32 %v592_v9, %v588_v5  ;;  %v446_v35 = vshrl.u32 %v2406_v61, 16 }
  0x39   : > { %v438_v37 = vrot.slane %v436_v27, 5  ;;  %v444_v41 = vrot.slane %v442_v30, 5  ;;  %v452_v46 = vshll.u32 %v2418_v20, 16  ;;  %v1893_v63 = vrot.slane %v2307_v62, 9  ;;  %v2036_v62 = vld [vmem:[%s2948_s2 + $0x40] sm:$0x30] }
  0x3a   : > { %v2434_v48 = vpack.c.b16 %v614_v31, %v613_v6  ;;  %v589_v49 = vsel %vm2291_vm4, %v584_v32, %v588_v5  ;;  %v594_v53 = vrot.slane %v593_v33, 4  ;;  %v448_v55 = vrot.slane %v446_v35, 4 }
  0x3b   : > { %v617_v12 = vunpack.c.l.b16 %v589_v49  ;;  %v439_v28 = vor.u32 %v438_v37, %v435_v22  ;;  %v454_v59 = vrot.slane %v452_v46, 5  ;;  %v844_v2 = vrot.slane %v2315_v10, 5 }
  0x3c   : > { %1846 = vmatmul.msk.bf16.gmra.mxu2 %vm632_vm3, %v2434_v48  ;;  %v599_v15 = vsel %vm2291_vm4, %v594_v53, %v598_v13  ;;  %v449_v29 = vor.u32 %v448_v55, %v444_v41  ;;  %v1971_v8 = vor.u32 %v2034_v47, %v1970_v36  ;;  %v1985_v9 = vor.u32 %v2035_v11, %v1984_v56  ;;  %v1999_v13 = vld [vmem:[%s2948_s2 + $0x40] sm:$0xf] }
  0x3d   : > { %v618_v3 = vunpack.c.l.b16 %v599_v15  ;;  %v440_v5 = vrot.slane %v439_v28, 4  ;;  %v846_v22 = vrot.slane %v844_v2, 4  ;;  %v1953_v27 = vor.u32 %v2033_v14, %v1952_v60  ;;  %v2018_v53 = vld [vmem:[%s2238_s12] sm:$0xff] }
  0x3e   : > { %v450_v21 = vrot.slane %v449_v29, 4  ;;  %v1319_v31 = vsel %vm657_vm0, %v1971_v8, 0  ;;  %v845_v35 = vsel %vm2457_vm7, %v1893_v63, %v844_v2  ;;  %v1425_v36 = vsel %vm657_vm0, %v1985_v9, 0  ;;  %v2019_v2 = vld [vmem:[%s2238_s12 + $0xc] sm:$0xff] }
  0x3f   : > { %v2467_v10 = vpack.c.b16 %v618_v3, %v617_v12  ;;  %v445_v30 = vsel %vm2291_vm4, %v440_v5, %v444_v41  ;;  %1328 = vmatpush.bf16.msra.mxu2 %v1319_v31  ;;  %v848_v41 = vsel %vm2457_vm7, %v846_v22, %v847_v42  ;;  %v1235_v46 = vsel %vm657_vm0, %v1953_v27, 0  ;;  %1434 = vmatpush.bf16.msra.mxu3 %v1425_v36  ;;  %v2521_v31 = vld [vmem:[%s2238_s12 + $0x18] sm:$0xff] }
  0x40   : > { %v455_v32 = vsel %vm2291_vm4, %v450_v21, %v454_v59  ;;  %v605_v33 = vunpack.c.l.b16 %v445_v30  ;;  %v2000_v47 = vor.u32 %v2036_v62, %v1999_v13  ;;  %1244 = vmatpush.bf16.msra.mxu1 %v1235_v46  ;;  %v901_v56 = vunpack.c.l.b16 %v845_v35 }
  0x41   : > { %1848 = vmatmul.msk.bf16.gmra.mxu3 %vm632_vm3, %v2467_v10  ;;  %v606_v37 = vunpack.c.l.b16 %v455_v32  ;;  %v902_v11 = vunpack.c.l.b16 %v848_v41  ;;  %v1895_v24 = vrot.slane %v2252_v16, 9  ;;  %v858_v42 = vrot.slane %v2255_v17, 5 }
  0x42   : > { %v1515_v55 = vsel %vm657_vm0, %v2000_v47, 0  ;;  %v861_v12 = vrot.slane %v2258_v18, 5  ;;  %v851_v59 = vrot.slane %v2406_v61, 5  ;;  %v1894_v16 = vrot.slane %v2396_v52, 9 }
  0x43   : > { %v620_v49 = vpack.c.b16 %v606_v37, %v605_v33  ;;  %1524 = vmatpush.bf16.msra.mxu0 %v1515_v55  ;;  %v917_v28 = vpack.c.b16 %v902_v11, %v901_v56  ;;  %v859_v60 = vsel %vm2457_vm7, %v1895_v24, %v858_v42  ;;  %v860_v14 = vrot.slane %v858_v42, 4  ;;  %v2546_v33 = vld [vmem:[%s2238_s12 + $0x30] sm:$0xff] }
  0x44   : > { %v905_v15 = vunpack.c.l.b16 %v859_v60  ;;  %v853_v17 = vrot.slane %v851_v59, 4  ;;  %v854_v18 = vrot.slane %v2418_v20, 5  ;;  %v852_v61 = vsel %vm2457_vm7, %v1894_v16, %v851_v59 }
  0x45   : > { %1842 = vmatmul.msk.bf16.gmra.mxu0 %vm632_vm3, %v620_v49  ;;  %v862_v29 = vsel %vm2457_vm7, %v860_v14, %v861_v12  ;;  %v903_v8 = vunpack.c.l.b16 %v852_v61  ;;  %v1896_v52 = vrot.slane %v2331_v38, 9  ;;  %v865_v20 = vrot.slane %v2338_v45, 5  ;;  %v2586_v12 = vld [vmem:[%s2238_s12 + $0x48] sm:$0xff] }
  0x46   : > { %v906_v63 = vunpack.c.l.b16 %v862_v29  ;;  %v855_v5 = vsel %vm2457_vm7, %v853_v17, %v854_v18  ;;  %v868_v21 = vrot.slane %v2347_v50, 5  ;;  %v2534_v50 = vld [vmem:[%s2238_s12 + $0x24] sm:$0xff]  ;;  %v872_v32 = vrot.slane %v2269_v25, 5 }
  0x47   : > { %1885 = vmatmul.msk.bf16.vlgmr.msrb.gmra.mxu1 %vm632_vm3, %v2018_v53  ;;  %v904_v9 = vunpack.c.l.b16 %v855_v5  ;;  %v866_v27 = vsel %vm2457_vm7, %v1896_v52, %v865_v20  ;;  %v867_v13 = vrot.slane %v865_v20, 4  ;;  %v1897_v35 = vrot.slane %v2265_v23, 9  ;;  %v2628_v52 = vld [vmem:[%s2238_s12 + $0x54] sm:$0xff] }
  0x48   : > { %v2500_v3 = vpack.c.b16 %v906_v63, %v905_v15  ;;  %v907_v62 = vunpack.c.l.b16 %v866_v27  ;;  %v874_v36 = vrot.slane %v872_v32, 4  ;;  %v875_v37 = vrot.slane %v2272_v26, 5 }
  0x49   : > { %v2512_v22 = vpack.c.b16 %v904_v9, %v903_v8  ;;  %v869_v30 = vsel %vm2457_vm7, %v867_v13, %v868_v21  ;;  %v873_v41 = vsel %vm2457_vm7, %v1897_v35, %v872_v32  ;;  %v879_v26 = vrot.slane %v2366_v0, 5  ;;  %v2633_v32 = vld [vmem:[%s2602_s30 + $0x8] sm:$0x1] }
  0x4a   : > { %v908_v38 = vunpack.c.l.b16 %v869_v30  ;;  %v876_v25 = vsel %vm2457_vm7, %v874_v36, %v875_v37  ;;  %v909_v46 = vunpack.c.l.b16 %v873_v41  ;;  %v1898_v53 = vrot.slane %v2359_v57, 9 }
  0x4b   : > { %v910_v47 = vunpack.c.l.b16 %v876_v25  ;;  %v881_v55 = vrot.slane %v879_v26, 4  ;;  %v882_v56 = vrot.slane %v2373_v4, 5  ;;  %v886_v4 = vrot.slane %v2287_v43, 5 }
  0x4c   : > { %1907 = vmatmul.msk.bf16.vlgmr.msrb.gmra.mxu2 %vm632_vm3, %v917_v28  ;;  %v2523_v45 = vpack.c.b16 %v908_v38, %v907_v62  ;;  %v880_v11 = vsel %vm2457_vm7, %v1898_v53, %v879_v26  ;;  %v1899_v28 = vrot.slane %v2280_v34, 9  ;;  %v889_v60 = vrot.slane %v2298_v54, 5  ;;  %v2609_v34 = vld [vmem:[%s2602_s30] sm:$0xf]  ;;  %v2612_v54 = vld [vmem:[%s2602_s30 + $0x4] sm:$0xf] }
  0x4d   : > { %v2560_v23 = vpack.c.b16 %v910_v47, %v909_v46  ;;  %v883_v0 = vsel %vm2457_vm7, %v881_v55, %v882_v56  ;;  %v911_v24 = vunpack.c.l.b16 %v880_v11  ;;  %v888_v59 = vrot.slane %v886_v4, 4 }
  0x4e   : > { %v912_v42 = vunpack.c.l.b16 %v883_v0  ;;  %v887_v15 = vsel %vm2457_vm7, %v1899_v28, %v886_v4  ;;  %v893_v16 = vrot.slane %v2387_v40, 5  ;;  %v1107_v18 = vshrl.u32 %v2609_v34, 16 }
  0x4f   : > { %v890_v43 = vsel %vm2457_vm7, %v888_v59, %v889_v60  ;;  %v913_v29 = vunpack.c.l.b16 %v887_v15  ;;  %v1110_v61 = vshll.u32 %v2609_v34, 16  ;;  %v1116_v5 = vshll.u32 %v2612_v54, 16  ;;  %v2665_v59 = vld [vmem:[%s2602_s30] sm:$0xff] }
  0x50   : > { %v2580_v57 = vpack.c.b16 %v912_v42, %v911_v24  ;;  %v914_v63 = vunpack.c.l.b16 %v890_v43  ;;  %v1120_v8 = vshrl.u32 %v2612_v54, 16  ;;  %v1900_v40 = vrot.slane %v2380_v19, 9 }
  0x51   : > { %1925 = vmatmul.msk.bf16.vlgmr.msrb.gmra.mxu3 %vm632_vm3, %v2019_v2  ;;  %v895_v20 = vrot.slane %v893_v16, 4  ;;  %v896_v21 = vrot.slane %v2393_v51, 5  ;;  %v1109_v27 = vrot.slane %v1107_v18, 4  ;;  %v1112_v13 = vrot.slane %v1110_v61, 5 }
  0x52   : > { %v1118_v62 = vrot.slane %v1116_v5, 5  ;;  %v1122_v30 = vrot.slane %v1120_v8, 4  ;;  %v894_v36 = vsel %vm2457_vm7, %v1900_v40, %v893_v16  ;;  %v1126_v41 = vshll.u32 %v2633_v32, 16 }
  0x53   : > { %v897_v19 = vsel %vm2457_vm7, %v895_v20, %v896_v21  ;;  %v1113_v37 = vor.u32 %v1112_v13, %v1109_v27  ;;  %v915_v46 = vunpack.c.l.b16 %v894_v36 }
  0x54   : > { %v1123_v51 = vor.u32 %v1122_v30, %v1118_v62  ;;  %v916_v47 = vunpack.c.l.b16 %v897_v19  ;;  %v1128_v56 = vrot.slane %v1126_v41, 5 }
  0x55   : > { %1939 = vmatmul.msk.bf16.vlgmr.msrb.gmra.mxu0 %vm632_vm3, %v620_v49  ;;  %v2566_v49 = vld [vmem:[%s2238_s12 + $0x3c] sm:$0xff]  ;;  %v1114_v53 = vrot.slane %v1113_v37, 4  ;;  %s1832_s12 = sshll.u32 %s2110_s21, 4 }
  0x56   : > { %v1124_v55 = vrot.slane %v1123_v51, 4  ;;  %v2652_v0 = vpack.c.b16 %v916_v47, %v915_v46  ;;  %p365_p8 = scmp.lt.s32.totalorder %s1832_s12, 31 }
  0x57   : > { %1886 = vmatmul.msk.bf16.gmra.mxu1 %vm632_vm3, %v2019_v2  ;;  %v2614_v2 = vpack.c.b16 %v914_v63, %v913_v29  ;;  %v1119_v42 = vsel %vm2291_vm4, %v1114_v53, %v1118_v62 }
  0x58   : > { %v1129_v4 = vsel %vm2291_vm4, %v1124_v55, %v1128_v56  ;;  %v1133_v60 = vunpack.c.l.b16 %v1119_v42  ;;  %s2972_s12 = smov (!%p365_p8, %s1832_s12), 31 }
  0x59   : > { %v1134_v15 = vunpack.c.l.b16 %v1129_v4  ;;  %s368_s11 = sadd.s32 %s1833_s9, %s2972_s12 }
  0x5a   : > { %s1834_s13 = sshll.u32 %s368_s11, 3 }
  0x5b   : > { %v2671_v29 = vpack.c.b16 %v1134_v15, %v1133_v60  ;;  %s2837_s18 = scalar_lea.vmem %s2952_s6, %s1834_s13 }
  0x5c   : > { %1908 = vmatmul.msk.bf16.gmra.mxu2 %vm632_vm3, %v2512_v22 }
  0x61   : > { %1926 = vmatmul.msk.bf16.gmra.mxu3 %vm632_vm3, %v2521_v31 }
  0x65   : > { %1940 = vmatmul.msk.bf16.gmra.mxu0 %vm632_vm3, %v2310_v7 }
  0x67   : > { %1887 = vmatmul.msk.bf16.gmra.mxu1 %vm632_vm3, %v2521_v31 }
  0x6c   : > { %1909 = vmatmul.msk.bf16.gmra.mxu2 %vm632_vm3, %v2500_v3 }
  0x71   : > { %1927 = vmatmul.msk.bf16.gmra.mxu3 %vm632_vm3, %v2534_v50 }
  0x75   : > { %1941 = vmatmul.msk.bf16.gmra.mxu0 %vm632_vm3, %v2413_v1 }
  0x77   : > { %1888 = vmatmul.msk.bf16.gmra.mxu1 %vm632_vm3, %v2534_v50 }
  0x7c   : > { %1910 = vmatmul.msk.bf16.gmra.mxu2 %vm632_vm3, %v2523_v45 }
  0x81   : > { %1928 = vmatmul.msk.bf16.gmra.mxu3 %vm632_vm3, %v2546_v33 }
  0x85   : > { %1942 = vmatmul.msk.bf16.gmra.mxu0 %vm632_vm3, %v2333_v39 }
  0x87   : > { %1889 = vmatmul.msk.bf16.gmra.mxu1 %vm632_vm3, %v2546_v33 }
  0x8c   : > { %1911 = vmatmul.msk.bf16.gmra.mxu2 %vm632_vm3, %v2560_v23 }
  0x91   : > { %1929 = vmatmul.msk.bf16.gmra.mxu3 %vm632_vm3, %v2566_v49 }
  0x95   : > { %1943 = vmatmul.msk.bf16.gmra.mxu0 %vm632_vm3, %v2434_v48 }
  0x97   : > { %1890 = vmatmul.msk.bf16.gmra.mxu1 %vm632_vm3, %v2566_v49 }
  0x9c   : > { %1912 = vmatmul.msk.bf16.gmra.mxu2 %vm632_vm3, %v2580_v57 }
  0xa1   : > { %1930 = vmatmul.msk.bf16.gmra.mxu3 %vm632_vm3, %v2586_v12  ;;  %v2592_v14 = vpop.f32.mrf.mxu1 }
  0xa5   : > { %1944 = vmatmul.msk.bf16.gmra.mxu0 %vm632_vm3, %v2361_v58 }
  0xa7   : > { %1891 = vmatmul.msk.bf16.gmra.mxu1 %vm632_vm3, %v2586_v12 }
  0xa9   : > { %v2617_v17 = vpop.f32.mrf.mxu1 }
  0xab   : > { %v2623_v9 = vpop.f32.mrf.mxu2 }
  0xac   : > { %1913 = vmatmul.msk.bf16.gmra.mxu2 %vm632_vm3, %v2614_v2 }
  0xaf   : > { %v670_v38 = vpop.f32.mrf.mxu0  ;;  %v2635_v35 = vpop.f32.mrf.mxu3 }
  0xb1   : > { %1931 = vmatmul.msk.bf16.gmra.mxu3 %vm632_vm3, %v2628_v52 }
  0xb3   : > { %v2648_v26 = vpop.f32.mrf.mxu2 }
  0xb4   : > { %v2644_v25 = vpop.f32.mrf.mxu1 }
  0xb5   : > { %1945 = vmatmul.msk.bf16.gmra.mxu0 %vm632_vm3, %v2467_v10 }
  0xb7   : > { %1892 = vmatmul.msk.bf16.gmra.mxu1 %vm632_vm3, %v2628_v52  ;;  %v672_v11 = vpop.f32.mrf.mxu0  ;;  %v2654_v24 = vpop.f32.mrf.mxu3 }
  0xbc   : > { %1914 = vmatmul.msk.bf16.gmra.mxu2 %vm632_vm3, %v2652_v0  ;;  %v2662_v28 = vpop.f32.mrf.mxu1 }
  0xbf   : > { %v2667_v43 = vpop.f32.mrf.mxu2 }
  0xc1   : > { %1932 = vmatmul.msk.bf16.gmra.mxu3 %vm632_vm3, %v2665_v59 }
  0xc2   : > { %v675_v63 = vpop.f32.mrf.mxu0 }
  0xc4   : > { %v2673_v16 = vpop.f32.mrf.mxu3  ;;  %v791_v18 = vpop.f32.mrf.mxu1 }
  0xc5   : > { %1946 = vmatmul.msk.bf16.gmra.mxu0 %vm632_vm3, %v2671_v29  ;;  %v792_v61 = vadd.f32 %v791_v18, %v670_v38 }
  0xc7   : > { %v2677_v5 = vpop.f32.mrf.mxu2  ;;  %1954 = vmatmul.msk.bf16.vlgmr.msra.gmra.mxu1 %vm632_vm3, %v2512_v22 }
  0xca   : > { %v677_v8 = vpop.f32.mrf.mxu0 }
  0xcc   : > { %v2681_v40 = vpop.f32.mrf.mxu3  ;;  %1972 = vmatmul.msk.bf16.vlgmr.msra.gmra.mxu2 %vm632_vm3, %v2521_v31  ;;  %v793_v20 = vpop.f32.mrf.mxu1 }
  0xcd   : > { %v794_v21 = vadd.f32 %v793_v20, %v672_v11 }
  0xcf   : > { %v966_v27 = vpop.f32.mrf.mxu2 }
  0xd0   : > { %v1006_v13 = vadd.f32 %v966_v27, %v792_v61 }
  0xd1   : > { %1986 = vmatmul.msk.bf16.vlgmr.msra.gmra.mxu3 %vm632_vm3, %v2310_v7 }
  0xd2   : > { %v1156_v62 = vpop.f32.mrf.mxu0 }
  0xd4   : > { %v1050_v30 = vpop.f32.mrf.mxu3  ;;  %v796_v38 = vpop.f32.mrf.mxu1 }
  0xd5   : > { %2001 = vmatmul.msk.bf16.vlgmr.msra.gmra.mxu0 %vm632_vm3, %v2500_v3  ;;  %v1090_v22 = vadd.f32 %v1050_v30, %v1006_v13  ;;  %v797_v36 = vadd.f32 %v796_v38, %v675_v63 }
  0xd7   : > { %v968_v19 = vpop.f32.mrf.mxu2  ;;  %1955 = vmatmul.msk.bf16.gmra.mxu1 %vm632_vm3, %v2500_v3  ;;  %v2691_v31 = vadd.f32 %v1156_v62, %v1090_v22 }
  0xd8   : > { %v1007_v37 = vadd.f32 %v968_v19, %v794_v21 }
  0xda   : > { %v1158_v51 = vpop.f32.mrf.mxu0 }
  0xdc   : > { %v1052_v41 = vpop.f32.mrf.mxu3  ;;  %1973 = vmatmul.msk.bf16.gmra.mxu2 %vm632_vm3, %v2534_v50  ;;  %v798_v7 = vpop.f32.mrf.mxu1 }
  0xdd   : > { %v1091_v46 = vadd.f32 %v1052_v41, %v1007_v37  ;;  %v799_v47 = vadd.f32 %v798_v7, %v677_v8 }
  0xdf   : > { %v971_v53 = vpop.f32.mrf.mxu2  ;;  %v2695_v55 = vadd.f32 %v1158_v51, %v1091_v46 }
  0xe0   : > { %v1008_v56 = vadd.f32 %v971_v53, %v797_v36 }
  0xe1   : > { %1987 = vmatmul.msk.bf16.gmra.mxu3 %vm632_vm3, %v2413_v1 }
  0xe2   : > { %v1161_v11 = vpop.f32.mrf.mxu0 }
  0xe4   : > { %v1055_v3 = vpop.f32.mrf.mxu3  ;;  %v801_v42 = vpop.f32.mrf.mxu1 }
  0xe5   : > { %2002 = vmatmul.msk.bf16.gmra.mxu0 %vm632_vm3, %v2523_v45  ;;  %v1092_v4 = vadd.f32 %v1055_v3, %v1008_v56  ;;  %v802_v60 = vadd.f32 %v801_v42, %v2592_v14 }
  0xe7   : > { %v973_v50 = vpop.f32.mrf.mxu2  ;;  %1956 = vmatmul.msk.bf16.gmra.mxu1 %vm632_vm3, %v2523_v45  ;;  %v2704_v15 = vadd.f32 %v1161_v11, %v1092_v4 }
  0xe8   : > { %v1009_v63 = vadd.f32 %v973_v50, %v799_v47 }
  0xea   : > { %v1163_v18 = vpop.f32.mrf.mxu0 }
  0xec   : > { %v1057_v61 = vpop.f32.mrf.mxu3  ;;  %1974 = vmatmul.msk.bf16.gmra.mxu2 %vm632_vm3, %v2546_v33  ;;  %v803_v1 = vpop.f32.mrf.mxu1 }
  0xed   : > { %v1093_v8 = vadd.f32 %v1057_v61, %v1009_v63  ;;  %v804_v20 = vadd.f32 %v803_v1, %v2617_v17 }
  0xef   : > { %v976_v21 = vpop.f32.mrf.mxu2  ;;  %v2709_v27 = vadd.f32 %v1163_v18, %v1093_v8 }
  0xf0   : > { %v1010_v14 = vadd.f32 %v976_v21, %v802_v60 }
  0xf1   : > { %1988 = vmatmul.msk.bf16.gmra.mxu3 %vm632_vm3, %v2333_v39 }
  0xf2   : > { %v1166_v45 = vpop.f32.mrf.mxu0 }
  0xf4   : > { %v1060_v13 = vpop.f32.mrf.mxu3  ;;  %v806_v62 = vpop.f32.mrf.mxu1 }
  0xf5   : > { %2003 = vmatmul.msk.bf16.gmra.mxu0 %vm632_vm3, %v2560_v23  ;;  %v1094_v30 = vadd.f32 %v1060_v13, %v1010_v14  ;;  %v807_v33 = vadd.f32 %v806_v62, %v2644_v25 }
  0xf7   : > { %v978_v38 = vpop.f32.mrf.mxu2  ;;  %1957 = vmatmul.msk.bf16.gmra.mxu1 %vm632_vm3, %v2560_v23  ;;  %v2718_v17 = vadd.f32 %v1166_v45, %v1094_v30 }
  0xf8   : > { %v1011_v22 = vadd.f32 %v978_v38, %v804_v20  ;;  %v2756_v38 = vld [vmem:[%s2602_s30 + $0xc] sm:$0xf] }
  0xfa   : > { %v1168_v36 = vpop.f32.mrf.mxu0 }
  0xfc   : > { %v1062_v19 = vpop.f32.mrf.mxu3  ;;  %1975 = vmatmul.msk.bf16.gmra.mxu2 %vm632_vm3, %v2566_v49  ;;  %v808_v39 = vpop.f32.mrf.mxu1 }
  0xfd   : > { %v1095_v37 = vadd.f32 %v1062_v19, %v1011_v22  ;;  %v809_v51 = vadd.f32 %v808_v39, %v2662_v28  ;;  %v2759_v22 = vld [vmem:[%s2602_s30 + $0x10] sm:$0xf]  ;;  %v1947_v39 = vrot.slane %v2609_v34, 9 }
  0xff   : > { %v981_v41 = vpop.f32.mrf.mxu2  ;;  %v2723_v7 = vadd.f32 %v1168_v36, %v1095_v37  ;;  %v1387_v37 = vshrl.u32 %v2756_v38, 16 }
 0x100   : > { %v1012_v25 = vadd.f32 %v981_v41, %v807_v33  ;;  %v1215_v33 = vrot.slane %v2612_v54, 5  ;;  %v1396_v41 = vshll.u32 %v2759_v22, 16 }
 0x101   : > { %1989 = vmatmul.msk.bf16.gmra.mxu3 %vm632_vm3, %v2434_v48  ;;  %v1389_v34 = vrot.slane %v1387_v37, 4 }
 0x102   : > { %v1171_v23 = vpop.f32.mrf.mxu0 }
 0x104   : > { %v1065_v46 = vpop.f32.mrf.mxu3  ;;  %v811_v47 = vpop.f32.mrf.mxu1 }
 0x105   : > { %2004 = vmatmul.msk.bf16.gmra.mxu0 %vm632_vm3, %v2580_v57  ;;  %v1096_v53 = vadd.f32 %v1065_v46, %v1012_v25  ;;  %v812_v4 = vadd.f32 %v811_v47, %v2623_v9 }
 0x107   : > { %v983_v56 = vpop.f32.mrf.mxu2  ;;  %1958 = vmatmul.msk.bf16.gmra.mxu1 %vm632_vm3, %v2580_v57  ;;  %v2731_v49 = vadd.f32 %v1171_v23, %v1096_v53 }
 0x108   : > { %v1013_v28 = vadd.f32 %v983_v56, %v809_v51  ;;  %v1217_v51 = vrot.slane %v1215_v33, 4  ;;  %v1216_v56 = vsel %vm2457_vm7, %v1947_v39, %v1215_v33  ;;  %v2027_v39 = vld [vmem:[%s2602_s30 + $0xc] sm:$0xff] }
 0x10a   : > { %v1173_v11 = vpop.f32.mrf.mxu0 }
 0x10c   : > { %v1067_v3 = vpop.f32.mrf.mxu3  ;;  %1976 = vmatmul.msk.bf16.gmra.mxu2 %vm632_vm3, %v2586_v12  ;;  %v813_v48 = vpop.f32.mrf.mxu1 }
 0x10d   : > { %v1097_v42 = vadd.f32 %v1067_v3, %v1013_v28  ;;  %v814_v12 = vadd.f32 %v813_v48, %v2648_v26  ;;  %v1398_v28 = vrot.slane %v1396_v41, 5  ;;  %v402_v3 = vld [vmem:[%s2602_s30 + $0x14] sm:$0x1] }
 0x10f   : > { %v986_v60 = vpop.f32.mrf.mxu2  ;;  %v2736_v50 = vadd.f32 %v1173_v11, %v1097_v42 }
 0x110   : > { %v1014_v63 = vadd.f32 %v986_v60, %v812_v4  ;;  %v1223_v4 = vunpack.c.l.b16 %v1216_v56 }
 0x111   : > { %1990 = vmatmul.msk.bf16.gmra.mxu3 %vm632_vm3, %v2361_v58 }
 0x112   : > { %v1176_v57 = vpop.f32.mrf.mxu0 }
 0x114   : > { %v1070_v18 = vpop.f32.mrf.mxu3  ;;  %v816_v61 = vpop.f32.mrf.mxu1 }
 0x115   : > { %2005 = vmatmul.msk.bf16.gmra.mxu0 %vm632_vm3, %v2614_v2  ;;  %v1098_v1 = vadd.f32 %v1070_v18, %v1014_v63  ;;  %v817_v13 = vadd.f32 %v816_v61, %v2667_v43  ;;  %v1406_v61 = vshll.u32 %v402_v3, 16 }
 0x117   : > { %v988_v8 = vpop.f32.mrf.mxu2  ;;  %1959 = vmatmul.msk.bf16.gmra.mxu1 %vm632_vm3, %v2614_v2  ;;  %v2745_v9 = vadd.f32 %v1176_v57, %v1098_v1 }
 0x118   : > { %v1015_v20 = vadd.f32 %v988_v8, %v814_v12 }
 0x11a   : > { %v1178_v21 = vpop.f32.mrf.mxu0 }
 0x11c   : > { %v1072_v58 = vpop.f32.mrf.mxu3  ;;  %1977 = vmatmul.msk.bf16.gmra.mxu2 %vm632_vm3, %v2628_v52  ;;  %v818_v14 = vpop.f32.mrf.mxu1  ;;  %v1218_v52 = vrot.slane %v2633_v32, 5  ;;  %v1400_v32 = vshrl.u32 %v2759_v22, 16 }
 0x11d   : > { %v1099_v45 = vadd.f32 %v1072_v58, %v1015_v20  ;;  %v819_v54 = vadd.f32 %v818_v14, %v2677_v5  ;;  %v1408_v14 = vrot.slane %v1406_v61, 5 }
 0x11e   : > { %v1219_v5 = vsel %vm2457_vm7, %v1217_v51, %v1218_v52  ;;  %v1402_v11 = vrot.slane %v1400_v32, 4 }
 0x11f   : > { %v991_v62 = vpop.f32.mrf.mxu2  ;;  %v2750_v26 = vadd.f32 %v1178_v21, %v1099_v45  ;;  %v1224_v60 = vunpack.c.l.b16 %v1219_v5  ;;  %v1495_v45 = vrot.slane %v2759_v22, 5 }
 0x120   : > { %v1016_v30 = vadd.f32 %v991_v62, %v817_v13  ;;  %v1403_v18 = vor.u32 %v1402_v11, %v1398_v28 }
 0x121   : > { %1991 = vmatmul.msk.bf16.gmra.mxu3 %vm632_vm3, %v2467_v10  ;;  %v1390_v10 = vshll.u32 %v2756_v38, 16  ;;  %v1225_v20 = vpack.c.b16 %v1224_v60, %v1223_v4  ;;  %v1497_v52 = vrot.slane %v1495_v45, 4 }
 0x122   : > { %v1181_v2 = vpop.f32.mrf.mxu0 }
 0x123   : > { %v1392_v47 = vrot.slane %v1390_v10, 5 }
 0x124   : > { %v1075_v36 = vpop.f32.mrf.mxu3  ;;  %v821_v19 = vpop.f32.mrf.mxu1 }
 0x125   : > { %2006 = vmatmul.msk.bf16.gmra.mxu0 %vm632_vm3, %v2652_v0  ;;  %v1100_v43 = vadd.f32 %v1075_v36, %v1016_v30  ;;  %v1393_v63 = vor.u32 %v1392_v47, %v1389_v34  ;;  %v822_v57 = vadd.f32 %v821_v19, %v2635_v35  ;;  %v1498_v36 = vrot.slane %v402_v3, 5 }
 0x127   : > { %v993_v25 = vpop.f32.mrf.mxu2  ;;  %1960 = vmatmul.msk.bf16.gmra.mxu1 %vm632_vm3, %v2652_v0  ;;  %v2772_v23 = vadd.f32 %v1181_v2, %v1100_v43  ;;  %v1394_v21 = vrot.slane %v1393_v63, 4  ;;  %v1994_v2 = vrot.slane %v2756_v38, 9 }
 0x128   : > { %v1017_v46 = vadd.f32 %v993_v25, %v819_v54 }
 0x129   : > { %v1399_v30 = vsel %vm2291_vm4, %v1394_v21, %v1398_v28  ;;  %v1496_v38 = vsel %vm2457_vm7, %v1994_v2, %v1495_v45 }
 0x12a   : > { %v1183_v53 = vpop.f32.mrf.mxu0  ;;  %v1413_v37 = vunpack.c.l.b16 %v1399_v30  ;;  %v1503_v25 = vunpack.c.l.b16 %v1496_v38 }
 0x12c   : > { %v1077_v48 = vpop.f32.mrf.mxu3  ;;  %1978 = vmatmul.msk.bf16.gmra.mxu2 %vm632_vm3, %v2665_v59  ;;  %v823_v0 = vpop.f32.mrf.mxu1  ;;  %v1404_v59 = vrot.slane %v1403_v18, 4 }
 0x12d   : > { %v1101_v42 = vadd.f32 %v1077_v48, %v1017_v46 }
 0x12e   : > { %v1409_v33 = vsel %vm2291_vm4, %v1404_v59, %v1408_v14  ;;  %v2818_v59 = vld [vmem:[%s2949_s3] ss:$0 sm:$0xff] }
 0x12f   : > { %v996_v1 = vpop.f32.mrf.mxu2  ;;  %v2782_v12 = vadd.f32 %v1183_v53, %v1101_v42  ;;  %v1414_v10 = vunpack.c.l.b16 %v1409_v33 }
 0x130   : > { %v1018_v8 = vadd.f32 %v996_v1, %v822_v57 }
 0x131   : > { %1992 = vmatmul.msk.bf16.gmra.mxu3 %vm632_vm3, %v2671_v29  ;;  %v824_v29 = vadd.f32 %v823_v0, %v2654_v24  ;;  %v1499_v24 = vsel %vm2457_vm7, %v1497_v52, %v1498_v36  ;;  %v1415_v32 = vpack.c.b16 %v1414_v10, %v1413_v37 }
 0x132   : > { %v1186_v58 = vpop.f32.mrf.mxu0  ;;  %v1504_v46 = vunpack.c.l.b16 %v1499_v24 }
 0x134   : > { %v1080_v13 = vpop.f32.mrf.mxu3  ;;  %v826_v62 = vpop.f32.mrf.mxu1  ;;  %v1505_v5 = vpack.c.b16 %v1504_v46, %v1503_v25 }
 0x135   : > { %2007 = vmatmul.msk.bf16.gmra.mxu0 %vm632_vm3, %v1225_v20  ;;  %v1102_v35 = vadd.f32 %v1080_v13, %v1018_v8  ;;  %v827_v34 = vadd.f32 %v826_v62, %v2673_v16 }
 0x137   : > { %v998_v19 = vpop.f32.mrf.mxu2  ;;  %1961 = vmatmul.msk.bf16.gmra.mxu1 %vm632_vm3, %v1225_v20  ;;  %v2795_v22 = vadd.f32 %v1186_v58, %v1102_v35 }
 0x138   : > { %v1019_v43 = vadd.f32 %v998_v19, %v824_v29  ;;  %v2832_v29 = vld [vmem:[%s2951_s5] ss:$0 sm:$0xff] }
 0x13a   : > { %v1188_v54 = vpop.f32.mrf.mxu0 }
 0x13c   : > { %v1082_v44 = vpop.f32.mrf.mxu3  ;;  %1979 = vmatmul.msk.bf16.gmra.mxu2 %vm632_vm3, %v2027_v39  ;;  %v828_v51 = vpop.f32.mrf.mxu1 }
 0x13d   : > { %v1103_v41 = vadd.f32 %v1082_v44, %v1019_v43  ;;  %v829_v48 = vadd.f32 %v828_v51, %v2681_v40 }
 0x13f   : > { %v1001_v47 = vpop.f32.mrf.mxu2  ;;  %v2804_v53 = vadd.f32 %v1188_v54, %v1103_v41 }
 0x140   : > { %v1020_v56 = vadd.f32 %v1001_v47, %v827_v34 }
 0x141   : > { %1993 = vmatmul.msk.bf16.gmra.mxu3 %vm632_vm3, %v1415_v32 }
 0x142   : > { %v1191_v6 = vpop.f32.mrf.mxu0 }
 0x144   : > { %v1085_v28 = vpop.f32.mrf.mxu3  ;;  %v1246_v11 = vpop.f32.mrf.mxu1 }
 0x145   : > { %2008 = vmatmul.msk.bf16.gmra.mxu0 %vm632_vm3, %v1505_v5  ;;  %v1104_v3 = vadd.f32 %v1085_v28, %v1020_v56  ;;  %v1286_v18 = vadd.f32 %v1246_v11, %v2691_v31  ;;  %v2824_v31 = vld [vmem:[%s2950_s4] ss:$0 sm:$0xff] }
 0x147   : > { %v1003_v0 = vpop.f32.mrf.mxu2  ;;  %v2809_v42 = vadd.f32 %v1191_v6, %v1104_v3 }
 0x148   : > { %v1021_v16 = vadd.f32 %v1003_v0, %v829_v48 }
 0x14a   : > { %v1193_v4 = vpop.f32.mrf.mxu0 }
 0x14c   : > { %v1087_v60 = vpop.f32.mrf.mxu3  ;;  %v1248_v63 = vpop.f32.mrf.mxu1 }
 0x14d   : > { %v1105_v57 = vadd.f32 %v1087_v60, %v1021_v16  ;;  %v1287_v45 = vadd.f32 %v1248_v63, %v2695_v55 }
 0x14f   : > { %v1330_v61 = vpop.f32.mrf.mxu2  ;;  %v2813_v1 = vadd.f32 %v1193_v4, %v1105_v57 }
 0x150   : > { %v1370_v8 = vadd.f32 %v1330_v61, %v1286_v18 }
 0x152   : > { %v1526_v20 = vpop.f32.mrf.mxu0 }
 0x154   : > { %v1436_v21 = vpop.f32.mrf.mxu3  ;;  %v1251_v40 = vpop.f32.mrf.mxu1 }
 0x155   : > { %v1476_v58 = vadd.f32 %v1436_v21, %v1370_v8  ;;  %v1288_v39 = vadd.f32 %v1251_v40, %v2704_v15 }
 0x157   : > { %v1566_v14 = vadd.f32 %v1526_v20, %v1476_v58  ;;  %v1332_v13 = vpop.f32.mrf.mxu2 }
 0x158   : > { %v1371_v35 = vadd.f32 %v1332_v13, %v1287_v45 }
 0x159   : > { %v1586_v62 = vmul.f32 %v2818_v59, %v1566_v14 }
 0x15a   : > { %v1528_v30 = vpop.f32.mrf.mxu0 }
 0x15b   : > { %v1606_v2 = vadd.f32 %v2824_v31, %v1586_v62 }
 0x15c   : > { %v1438_v33 = vpop.f32.mrf.mxu3  ;;  %v1253_v52 = vpop.f32.mrf.mxu1 }
 0x15d   : > { %vm1622_vm8 = vcmp.gt.f32.partialorder %v1606_v2, 0.0  ;;  %v1638_v36 = vmul.f32 0.01, %v1606_v2  ;;  %v1477_v19 = vadd.f32 %v1438_v33, %v1371_v35  ;;  %v1289_v15 = vadd.f32 %v1253_v52, %v2709_v27 }
 0x15f   : > { %v1654_v55 = vsel %vm1622_vm8, %v1606_v2, %v1638_v36  ;;  %v1567_v43 = vadd.f32 %v1528_v30, %v1477_v19  ;;  %v1335_v37 = vpop.f32.mrf.mxu2 }
 0x160   : > { %v1674_v10 = vadd.f32 %v2832_v29, %v1654_v55  ;;  %v1372_v38 = vadd.f32 %v1335_v37, %v1288_v39 }
 0x161   : > { %v1587_v54 = vmul.f32 %v2818_v59, %v1567_v43 }
 0x162   : > { %1690 = vst.msk [vmem:[%s2837_s18] sm:$0xff] %vm632_vm3, %v1674_v10  ;;  %v1531_v24 = vpop.f32.mrf.mxu0 }
 0x163   : > { %v1607_v44 = vadd.f32 %v2824_v31, %v1587_v54 }
 0x164   : > { %v1441_v51 = vpop.f32.mrf.mxu3  ;;  %v1256_v41 = vpop.f32.mrf.mxu1 }
 0x165   : > { %vm1623_vm9 = vcmp.gt.f32.partialorder %v1607_v44, 0.0  ;;  %v1639_v32 = vmul.f32 0.01, %v1607_v44  ;;  %v1478_v25 = vadd.f32 %v1441_v51, %v1372_v38  ;;  %v1290_v27 = vadd.f32 %v1256_v41, %v2718_v17 }
 0x167   : > { %v1655_v46 = vsel %vm1623_vm9, %v1607_v44, %v1639_v32  ;;  %v1568_v34 = vadd.f32 %v1531_v24, %v1478_v25  ;;  %v1337_v47 = vpop.f32.mrf.mxu2 }
 0x168   : > { %v1675_v56 = vadd.f32 %v2832_v29, %v1655_v46  ;;  %v1373_v6 = vadd.f32 %v1337_v47, %v1289_v15 }
 0x169   : > { %v1588_v5 = vmul.f32 %v2818_v59, %v1568_v34 }
 0x16a   : > { %1691 = vst.msk [vmem:[%s2837_s18 + $0x8] sm:$0xff] %vm632_vm3, %v1675_v56  ;;  %v1533_v28 = vpop.f32.mrf.mxu0 }
 0x16b   : > { %v1608_v11 = vadd.f32 %v2824_v31, %v1588_v5 }
 0x16c   : > { %v1443_v3 = vpop.f32.mrf.mxu3  ;;  %v1258_v48 = vpop.f32.mrf.mxu1 }
 0x16d   : > { %vm1624_vm10 = vcmp.gt.f32.partialorder %v1608_v11, 0.0  ;;  %v1640_v0 = vmul.f32 0.01, %v1608_v11  ;;  %v1479_v16 = vadd.f32 %v1443_v3, %v1373_v6  ;;  %v1291_v17 = vadd.f32 %v1258_v48, %v2723_v7 }
 0x16f   : > { %v1656_v4 = vsel %vm1624_vm10, %v1608_v11, %v1640_v0  ;;  %v1569_v60 = vadd.f32 %v1533_v28, %v1479_v16  ;;  %v1340_v63 = vpop.f32.mrf.mxu2 }
 0x170   : > { %v1676_v57 = vadd.f32 %v2832_v29, %v1656_v4  ;;  %v1374_v61 = vadd.f32 %v1340_v63, %v1290_v27 }
 0x171   : > { %v1589_v18 = vmul.f32 %v2818_v59, %v1569_v60 }
 0x172   : > { %1692 = vst.msk [vmem:[%s2837_s18 + $0x10] sm:$0xff] %vm632_vm3, %v1676_v57  ;;  %v1536_v8 = vpop.f32.mrf.mxu0 }
 0x173   : > { %v1609_v20 = vadd.f32 %v2824_v31, %v1589_v18 }
 0x174   : > { %v1446_v21 = vpop.f32.mrf.mxu3  ;;  %v1261_v40 = vpop.f32.mrf.mxu1 }
 0x175   : > { %vm1625_vm11 = vcmp.gt.f32.partialorder %v1609_v20, 0.0  ;;  %v1641_v58 = vmul.f32 0.01, %v1609_v20  ;;  %v1480_v14 = vadd.f32 %v1446_v21, %v1374_v61  ;;  %v1292_v7 = vadd.f32 %v1261_v40, %v2731_v49 }
 0x177   : > { %v1657_v45 = vsel %vm1625_vm11, %v1609_v20, %v1641_v58  ;;  %v1570_v13 = vadd.f32 %v1536_v8, %v1480_v14  ;;  %v1342_v62 = vpop.f32.mrf.mxu2 }
 0x178   : > { %v1677_v35 = vadd.f32 %v2832_v29, %v1657_v45  ;;  %v1375_v2 = vadd.f32 %v1342_v62, %v1291_v17 }
 0x179   : > { %v1590_v30 = vmul.f32 %v2818_v59, %v1570_v13 }
 0x17a   : > { %1693 = vst.msk [vmem:[%s2837_s18 + $0x18] sm:$0xff] %vm632_vm3, %v1677_v35  ;;  %v1538_v33 = vpop.f32.mrf.mxu0 }
 0x17b   : > { %v1610_v52 = vadd.f32 %v2824_v31, %v1590_v30 }
 0x17c   : > { %v1448_v36 = vpop.f32.mrf.mxu3  ;;  %v1263_v19 = vpop.f32.mrf.mxu1 }
 0x17d   : > { %vm1626_vm12 = vcmp.gt.f32.partialorder %v1610_v52, 0.0  ;;  %v1642_v55 = vmul.f32 0.01, %v1610_v52  ;;  %v1481_v43 = vadd.f32 %v1448_v36, %v1375_v2  ;;  %v1293_v49 = vadd.f32 %v1263_v19, %v2736_v50 }
 0x17f   : > { %v1658_v39 = vsel %vm1626_vm12, %v1610_v52, %v1642_v55  ;;  %v1571_v37 = vadd.f32 %v1538_v33, %v1481_v43  ;;  %v1345_v10 = vpop.f32.mrf.mxu2 }
 0x180   : > { %v1678_v54 = vadd.f32 %v2832_v29, %v1658_v39  ;;  %v1376_v24 = vadd.f32 %v1345_v10, %v1292_v7 }
 0x181   : > { %v1591_v38 = vmul.f32 %v2818_v59, %v1571_v37 }
 0x182   : > { %1694 = vst.msk [vmem:[%s2837_s18 + $0x20] sm:$0xff] %vm632_vm3, %v1678_v54  ;;  %v1541_v44 = vpop.f32.mrf.mxu0 }
 0x183   : > { %v1611_v51 = vadd.f32 %v2824_v31, %v1591_v38 }
 0x184   : > { %v1451_v41 = vpop.f32.mrf.mxu3  ;;  %v1266_v32 = vpop.f32.mrf.mxu1 }
 0x185   : > { %vm1627_vm13 = vcmp.gt.f32.partialorder %v1611_v51, 0.0  ;;  %v1643_v25 = vmul.f32 0.01, %v1611_v51  ;;  %v1482_v46 = vadd.f32 %v1451_v41, %v1376_v24  ;;  %v1294_v50 = vadd.f32 %v1266_v32, %v2745_v9 }
 0x187   : > { %v1659_v34 = vsel %vm1627_vm13, %v1611_v51, %v1643_v25  ;;  %v1572_v15 = vadd.f32 %v1541_v44, %v1482_v46  ;;  %v1347_v47 = vpop.f32.mrf.mxu2 }
 0x188   : > { %v1679_v56 = vadd.f32 %v2832_v29, %v1659_v34  ;;  %v1377_v6 = vadd.f32 %v1347_v47, %v1293_v49 }
 0x189   : > { %v1592_v5 = vmul.f32 %v2818_v59, %v1572_v15 }
 0x18a   : > { %1695 = vst.msk [vmem:[%s2837_s18 + $0x28] sm:$0xff] %vm632_vm3, %v1679_v56  ;;  %v1543_v28 = vpop.f32.mrf.mxu0 }
 0x18b   : > { %v1612_v11 = vadd.f32 %v2824_v31, %v1592_v5 }
 0x18c   : > { %v1453_v3 = vpop.f32.mrf.mxu3  ;;  %v1268_v48 = vpop.f32.mrf.mxu1 }
 0x18d   : > { %vm1628_vm14 = vcmp.gt.f32.partialorder %v1612_v11, 0.0  ;;  %v1644_v0 = vmul.f32 0.01, %v1612_v11  ;;  %v1483_v16 = vadd.f32 %v1453_v3, %v1377_v6  ;;  %v1295_v9 = vadd.f32 %v1268_v48, %v2750_v26 }
 0x18f   : > { %v1660_v4 = vsel %vm1628_vm14, %v1612_v11, %v1644_v0  ;;  %v1573_v60 = vadd.f32 %v1543_v28, %v1483_v16  ;;  %v1350_v27 = vpop.f32.mrf.mxu2 }
 0x190   : > { %v1680_v63 = vadd.f32 %v2832_v29, %v1660_v4  ;;  %v1378_v18 = vadd.f32 %v1350_v27, %v1294_v50 }
 0x191   : > { %v1593_v57 = vmul.f32 %v2818_v59, %v1573_v60 }
 0x192   : > { %1696 = vst.msk [vmem:[%s2837_s18 + $0x30] sm:$0xff] %vm632_vm3, %v1680_v63  ;;  %v1546_v61 = vpop.f32.mrf.mxu0 }
 0x193   : > { %v1613_v8 = vadd.f32 %v2824_v31, %v1593_v57 }
 0x194   : > { %v1456_v20 = vpop.f32.mrf.mxu3  ;;  %v1271_v21 = vpop.f32.mrf.mxu1 }
 0x195   : > { %vm1629_vm15 = vcmp.gt.f32.partialorder %v1613_v8, 0.0  ;;  %v1645_v40 = vmul.f32 0.01, %v1613_v8  ;;  %v1484_v58 = vadd.f32 %v1456_v20, %v1378_v18  ;;  %v1296_v26 = vadd.f32 %v1271_v21, %v2772_v23 }
 0x197   : > { %v1661_v14 = vsel %vm1629_vm15, %v1613_v8, %v1645_v40  ;;  %v1574_v45 = vadd.f32 %v1546_v61, %v1484_v58  ;;  %v1352_v13 = vpop.f32.mrf.mxu2 }
 0x198   : > { %v1681_v17 = vadd.f32 %v2832_v29, %v1661_v14  ;;  %v1379_v35 = vadd.f32 %v1352_v13, %v1295_v9 }
 0x199   : > { %v1594_v62 = vmul.f32 %v2818_v59, %v1574_v45 }
 0x19a   : > { %1697 = vst.msk [vmem:[%s2837_s18 + $0x38] sm:$0xff] %vm632_vm3, %v1681_v17  ;;  %v1548_v30 = vpop.f32.mrf.mxu0 }
 0x19b   : > { %v1614_v2 = vadd.f32 %v2824_v31, %v1594_v62 }
 0x19c   : > { %v1458_v33 = vpop.f32.mrf.mxu3  ;;  %v1273_v52 = vpop.f32.mrf.mxu1 }
 0x19d   : > { %vm1630_vm0 = vcmp.gt.f32.partialorder %v1614_v2, 0.0  ;;  %v1646_v36 = vmul.f32 0.01, %v1614_v2  ;;  %v1485_v19 = vadd.f32 %v1458_v33, %v1379_v35  ;;  %v1297_v23 = vadd.f32 %v1273_v52, %v2782_v12 }
 0x19f   : > { %v1662_v55 = vsel %vm1630_vm0, %v1614_v2, %v1646_v36  ;;  %v1575_v43 = vadd.f32 %v1548_v30, %v1485_v19  ;;  %v1355_v39 = vpop.f32.mrf.mxu2 }
 0x1a0   : > { %v1682_v37 = vadd.f32 %v2832_v29, %v1662_v55  ;;  %v1380_v10 = vadd.f32 %v1355_v39, %v1296_v26 }
 0x1a1   : > { %v1595_v7 = vmul.f32 %v2818_v59, %v1575_v43 }
 0x1a2   : > { %1698 = vst.msk [vmem:[%s2837_s18 + $0x40] sm:$0xff] %vm632_vm3, %v1682_v37  ;;  %v1551_v54 = vpop.f32.mrf.mxu0 }
 0x1a3   : > { %v1615_v38 = vadd.f32 %v2824_v31, %v1595_v7 }
 0x1a4   : > { %v1461_v24 = vpop.f32.mrf.mxu3  ;;  %v1276_v41 = vpop.f32.mrf.mxu1 }
 0x1a5   : > { %vm1631_vm1 = vcmp.gt.f32.partialorder %v1615_v38, 0.0  ;;  %v1647_v44 = vmul.f32 0.01, %v1615_v38  ;;  %v1486_v51 = vadd.f32 %v1461_v24, %v1380_v10  ;;  %v1298_v12 = vadd.f32 %v1276_v41, %v2795_v22 }
 0x1a7   : > { %v1663_v32 = vsel %vm1631_vm1, %v1615_v38, %v1647_v44  ;;  %v1576_v25 = vadd.f32 %v1551_v54, %v1486_v51  ;;  %v1357_v46 = vpop.f32.mrf.mxu2 }
 0x1a8   : > { %v1683_v34 = vadd.f32 %v2832_v29, %v1663_v32  ;;  %v1381_v49 = vadd.f32 %v1357_v46, %v1297_v23 }
 0x1a9   : > { %v1596_v15 = vmul.f32 %v2818_v59, %v1576_v25 }
 0x1aa   : > { %1699 = vst.msk [vmem:[%s2837_s18 + $0x48] sm:$0xff] %vm632_vm3, %v1683_v34  ;;  %v1553_v47 = vpop.f32.mrf.mxu0 }
 0x1ab   : > { %v1616_v56 = vadd.f32 %v2824_v31, %v1596_v15 }
 0x1ac   : > { %v1463_v5 = vpop.f32.mrf.mxu3  ;;  %v1278_v0 = vpop.f32.mrf.mxu1 }
 0x1ad   : > { %vm1632_vm2 = vcmp.gt.f32.partialorder %v1616_v56, 0.0  ;;  %v1648_v6 = vmul.f32 0.01, %v1616_v56  ;;  %v1487_v28 = vadd.f32 %v1463_v5, %v1381_v49  ;;  %v1299_v22 = vadd.f32 %v1278_v0, %v2804_v53 }
 0x1af   : > { %v1664_v11 = vsel %vm1632_vm2, %v1616_v56, %v1648_v6  ;;  %v1577_v3 = vadd.f32 %v1553_v47, %v1487_v28  ;;  %v1360_v48 = vpop.f32.mrf.mxu2 }
 0x1b0   : > { %v1684_v16 = vadd.f32 %v2832_v29, %v1664_v11  ;;  %v1382_v60 = vadd.f32 %v1360_v48, %v1298_v12 }
 0x1b1   : > { %v1597_v4 = vmul.f32 %v2818_v59, %v1577_v3 }
 0x1b2   : > { %1700 = vst.msk [vmem:[%s2837_s18 + $0x50] sm:$0xff] %vm632_vm3, %v1684_v16  ;;  %v1556_v50 = vpop.f32.mrf.mxu0 }
 0x1b3   : > { %v1617_v27 = vadd.f32 %v2824_v31, %v1597_v4 }
 0x1b4   : > { %v1466_v63 = vpop.f32.mrf.mxu3  ;;  %v1281_v14 = vpop.f32.mrf.mxu1 }
 0x1b5   : > { %vm1633_vm4 = vcmp.gt.f32.partialorder %v1617_v27, 0.0  ;;  %v1649_v57 = vmul.f32 0.01, %v1617_v27  ;;  %v1488_v18 = vadd.f32 %v1466_v63, %v1382_v60  ;;  %v1300_v53 = vadd.f32 %v1281_v14, %v2809_v42 }
 0x1b7   : > { %v1665_v61 = vsel %vm1633_vm4, %v1617_v27, %v1649_v57  ;;  %v1578_v8 = vadd.f32 %v1556_v50, %v1488_v18  ;;  %v1362_v20 = vpop.f32.mrf.mxu2 }
 0x1b8   : > { %v1685_v21 = vadd.f32 %v2832_v29, %v1665_v61  ;;  %v1383_v58 = vadd.f32 %v1362_v20, %v1299_v22 }
 0x1b9   : > { %v1598_v40 = vmul.f32 %v2818_v59, %v1578_v8 }
 0x1ba   : > { %1701 = vst.msk [vmem:[%s2837_s18 + $0x58] sm:$0xff] %vm632_vm3, %v1685_v21  ;;  %v1558_v45 = vpop.f32.mrf.mxu0 }
 0x1bb   : > { %v1618_v9 = vadd.f32 %v2824_v31, %v1598_v40 }
 0x1bc   : > { %v1468_v13 = vpop.f32.mrf.mxu3  ;;  %v1283_v55 = vpop.f32.mrf.mxu1 }
 0x1bd   : > { %vm1634_vm5 = vcmp.gt.f32.partialorder %v1618_v9, 0.0  ;;  %v1650_v17 = vmul.f32 0.01, %v1618_v9  ;;  %v1489_v62 = vadd.f32 %v1468_v13, %v1383_v58  ;;  %v1301_v42 = vadd.f32 %v1283_v55, %v2813_v1 }
 0x1bf   : > { %v1666_v35 = vsel %vm1634_vm5, %v1618_v9, %v1650_v17  ;;  %v1579_v30 = vadd.f32 %v1558_v45, %v1489_v62  ;;  %v1365_v2 = vpop.f32.mrf.mxu2 }
 0x1c0   : > { %v1686_v33 = vadd.f32 %v2832_v29, %v1666_v35  ;;  %v1384_v36 = vadd.f32 %v1365_v2, %v1300_v53 }
 0x1c1   : > { %v1599_v52 = vmul.f32 %v2818_v59, %v1579_v30 }
 0x1c2   : > { %1702 = vst.msk [vmem:[%s2837_s18 + $0x60] sm:$0xff] %vm632_vm3, %v1686_v33  ;;  %v1561_v43 = vpop.f32.mrf.mxu0 }
 0x1c3   : > { %v1619_v19 = vadd.f32 %v2824_v31, %v1599_v52 }
 0x1c4   : > { %v1471_v26 = vpop.f32.mrf.mxu3 }
 0x1c5   : > { %vm1635_vm6 = vcmp.gt.f32.partialorder %v1619_v19, 0.0  ;;  %v1651_v39 = vmul.f32 0.01, %v1619_v19  ;;  %v1490_v37 = vadd.f32 %v1471_v26, %v1384_v36 }
 0x1c7   : > { %v1667_v7 = vsel %vm1635_vm6, %v1619_v19, %v1651_v39  ;;  %v1580_v10 = vadd.f32 %v1561_v43, %v1490_v37  ;;  %v1367_v54 = vpop.f32.mrf.mxu2 }
 0x1c8   : > { %v1687_v38 = vadd.f32 %v2832_v29, %v1667_v7  ;;  %v1385_v44 = vadd.f32 %v1367_v54, %v1301_v42 }
 0x1c9   : > { %v1600_v24 = vmul.f32 %v2818_v59, %v1580_v10 }
 0x1ca   : > { %1703 = vst.msk [vmem:[%s2837_s18 + $0x68] sm:$0xff] %vm632_vm3, %v1687_v38  ;;  %v1563_v23 = vpop.f32.mrf.mxu0 }
 0x1cb   : > { %v1620_v51 = vadd.f32 %v2824_v31, %v1600_v24 }
 0x1cc   : > { %v1473_v41 = vpop.f32.mrf.mxu3 }
 0x1cd   : > { %vm1636_vm7 = vcmp.gt.f32.partialorder %v1620_v51, 0.0  ;;  %v1652_v32 = vmul.f32 0.01, %v1620_v51  ;;  %v1491_v25 = vadd.f32 %v1473_v41, %v1385_v44 }
 0x1cf   : > { %v1668_v46 = vsel %vm1636_vm7, %v1620_v51, %v1652_v32  ;;  %v1581_v34 = vadd.f32 %v1563_v23, %v1491_v25 }
 0x1d0   : > { %v1688_v1 = vadd.f32 %v2832_v29, %v1668_v46 }
 0x1d1   : > { %v1601_v15 = vmul.f32 %v2818_v59, %v1581_v34 }
 0x1d2   : > { %1704 = vst.msk [vmem:[%s2837_s18 + $0x70] sm:$0xff] %vm632_vm3, %v1688_v1 }
 0x1d3   : > { %v1621_v49 = vadd.f32 %v2824_v31, %v1601_v15 }
 0x1d5   : > { %vm1637_vm8 = vcmp.gt.f32.partialorder %v1621_v49, 0.0  ;;  %v1653_v47 = vmul.f32 0.01, %v1621_v49 }
 0x1d7   : > { %v1669_v56 = vsel %vm1637_vm8, %v1621_v49, %v1653_v47 }
 0x1d8   : > { %v1689_v5 = vadd.f32 %v2832_v29, %v1669_v56 }
 0x1da   : > { %1705 = vst.msk [vmem:[%s2837_s18 + $0x78] sm:$0xff] %vm632_vm3, %v1689_v5 }
 0x1db PF: > { %s16_s25 = sadd.s32 1, %s2126_s25   ;;  %s2957_s21 = smov %s2118_s23 }
 0x1dc   : > { %p13_p9 = scmp.ge.s32.totalorder %s16_s25, 6   ;;  %s2958_s22 = smov %s2122_s24 }
 0x1dd   : > { %s2959_s23 = smov %s2962_s26  ;;  %s2960_s24 = smov %s2966_s27 }
 0x1de   :  { %15 = sbr.rel (!%p13_p9) target bundleno = 3 (0x3), region = 85 }

</bundles_post_ra>
